<compile_context>
chip_gen: v7x
topology: tpu7x:2x2x1
jax: 0.10.0
libtpu: 0.0.40
codegen_flags: <defaults>
</compile_context>

<pallas_src>
import functools

import jax
import jax.numpy as jnp
from jax.experimental import pallas as pl
from jax.experimental.pallas import tpu as pltpu

RF = 3              # rf_num (module default)
KS = 7              # conv1 kernel size
PAD = KS // 2
HID = RF * 16       # 48
G8 = 8              # sublane group size: every per-tap row group padded to 8
BN_EPS = 1e-5


def _mrf_kernel(W, x_ref, mx7_ref, my7_ref, m3_ref,
                wc_ref, w1_ref, s1_ref, w2_ref, b2_ref, o_ref):
    C = x_ref.shape[1]
    L = x_ref.shape[3]

    def rot(v, dy, dx):
        """v read at flat-lane offset + dy*W + dx (wrap positions masked by caller)."""
        sh = (-(dy * W + dx)) % L
        return v if sh == 0 else pltpu.roll(v, sh, axis=1)

    # ---- per-rf channel mean / max: C-way VPU adds/maxes on full (RF, L) slabs ---
    x = x_ref[0]                                     # (C, RF, L)
    acc = x[0]
    mxv = x[0]
    for c in range(1, C):
        acc = acc + x[c]
        mxv = jnp.maximum(mxv, x[c])
    avg = acc * (1.0 / C)
    am8 = jnp.concatenate(
        [avg, mxv, jnp.zeros((G8 - 2 * RF, L), jnp.float32)], axis=0)   # (8, L)

    # ---- shared 7x7 conv (2 -> 1 per rf), separable dx/dy decomposition ---------
    # dx-im2col: 7 lane rolls + x-masks on one 8-row slab -> aligned (56, L) patch.
    pieces = []
    for dxk in range(KS):
        dx = dxk - PAD
        if dx == 0:
            pieces.append(am8)
        else:
            pieces.append(rot(am8, 0, dx) * mx7_ref[dxk:dxk + 1, :])
    patch1 = jnp.concatenate(pieces, axis=0)                             # (56, L)
    # ONE matmul (contraction over dx and channel) -> all 7*rf dy-partials.
    pdy = jnp.dot(wc_ref[...], patch1, preferred_element_type=jnp.float32)  # (56, L)
    # dy roll-accumulate: 7 (8,128)-aligned slices, 6 rolls/masks, 6 adds.
    s8 = None
    for dyk in range(KS):
        dy = dyk - PAD
        blk = pdy[dyk * G8:(dyk + 1) * G8, :]
        if dy != 0:
            blk = rot(blk, dy, 0) * my7_ref[dyk:dyk + 1, :]
        s8 = blk if s8 is None else s8 + blk                             # (8, L), rows >= RF are 0

    # ---- attention[0]: 3x3 conv (rf -> 48) as ONE matmul over an aligned im2col --
    pieces2 = []
    for ky in range(3):
        for kx in range(3):
            dy, dx = ky - 1, kx - 1
            if dy == 0 and dx == 0:
                pieces2.append(s8)
            else:
                t = ky * 3 + kx
                pieces2.append(rot(s8, dy, dx) * m3_ref[t:t + 1, :])
    patch2 = jnp.concatenate(pieces2, axis=0)                            # (72, L)
    h = jnp.dot(w1_ref[...], patch2, preferred_element_type=jnp.float32)  # (48, L)
    h = jnp.maximum(h + s1_ref[...], 0.0)   # folded conv bias + BatchNorm(eval), ReLU

    # ---- attention[3]: 3x3 conv (48 -> rf): ONE matmul for all tap partials,
    #      then an aligned 9-tap roll-accumulate (col2im) + bias --------------------
    big = jnp.dot(w2_ref[...], h, preferred_element_type=jnp.float32)    # (72, L)
    acc3 = None
    for ky in range(3):
        for kx in range(3):
            dy, dx = ky - 1, kx - 1
            t = ky * 3 + kx
            blk = big[t * G8:(t + 1) * G8, :]
            if not (dy == 0 and dx == 0):
                blk = rot(blk, dy, dx) * m3_ref[t:t + 1, :]
            acc3 = blk if acc3 is None else acc3 + blk                   # (8, L)
    logits = acc3[0:RF, :] + b2_ref[...]                                 # (RF, L)

    # ---- softmax over the rf rows: whole-slab XLU max/sum + one EUP exp ----------
    m = jnp.max(logits, axis=0, keepdims=True)
    e = jnp.exp(logits - m)
    den = jnp.sum(e, axis=0, keepdims=True)
    o_ref[0] = e * pl.reciprocal(den, approx=True)                       # (RF, L)


def _auto_num_blocks(B):
    """2 parallel blocks on v7x (two TensorCores), else pack the full batch into lanes."""
    try:
        kind = jax.devices()[0].device_kind.lower()
    except Exception:
        kind = ""
    want = 2 if ("v7" in kind or "7x" in kind) else 1
    nb = max(1, min(want, B))
    while B % nb:
        nb -= 1
    return nb


def mrf_attention_forward(x_list, params, num_blocks=None):
    """x_list: rf_num NCHW arrays; params: PyTorch-layout weights. Returns NCHW."""
    wc1, w1, b1, gamma, beta, rmean, rvar, w2, b2 = params
    B, C, H, W = x_list[0].shape
    HW = H * W

    NB = _auto_num_blocks(B) if num_blocks is None else num_blocks
    assert B % NB == 0
    Bp = B // NB
    L = Bp * HW          # lane extent per grid step (batch packed onto lanes)

    # Single stacked, channels-leading, lane-dense input: (NB, C, RF, Bp*HW).
    xs = jnp.stack([xi.astype(jnp.float32) for xi in x_list], axis=2)    # (B, C, RF, H, W)
    x = (xs.reshape(NB, Bp, C, RF, HW)
           .transpose(0, 2, 3, 1, 4)
           .reshape(NB, C, RF, L))

    # conv1.weight (1,2,7,7) -> (56,56) block-diag weight: out row dy*8+r,
    # in row dx*8 + c*RF + r (r < RF), all other rows/cols zero (8-sublane padded).
    w7 = wc1[0].astype(jnp.float32)                                      # (2, 7, 7)
    S = jnp.zeros((2, G8, G8), jnp.float32)
    for c in range(2):
        for r in range(RF):
            S = S.at[c, r, c * RF + r].set(1.0)
    wc_bd = jnp.einsum('cij,cyx->yixj', S, w7).reshape(KS * G8, KS * G8)

    # attention[0] conv weight with BatchNorm(eval) scale folded; bias+shift as a column.
    inv_std = 1.0 / jnp.sqrt(rvar.astype(jnp.float32) + BN_EPS)
    scale = gamma.astype(jnp.float32) * inv_std
    shift = beta.astype(jnp.float32) - rmean.astype(jnp.float32) * scale
    w1s = w1.astype(jnp.float32) * scale[:, None, None, None]            # (48, RF, 3, 3)
    w1_aug = jnp.pad(jnp.transpose(w1s, (0, 2, 3, 1)),
                     ((0, 0), (0, 0), (0, 0), (0, G8 - RF))).reshape(HID, 9 * G8)
    shift1 = (b1.astype(jnp.float32) * scale + shift).reshape(HID, 1)

    # attention[3] weight for the transposed (col2im) formulation: row tap*8 + r.
    w2_rows = jnp.pad(jnp.transpose(w2.astype(jnp.float32), (2, 3, 0, 1)),
                      ((0, 0), (0, 0), (0, G8 - RF), (0, 0))).reshape(9 * G8, HID)
    b2_col = b2.astype(jnp.float32).reshape(RF, 1)

    # Per-offset validity masks (zero padding), factored x/y for the 7x7 conv.
    # Lane index = b_local*HW + spatial, so the masks also zero every roll that
    # would wrap across a batch segment boundary.
    pos = jnp.arange(L)
    yy = (pos % HW) // W
    xx = pos % W
    mx7 = jnp.stack([(xx + k - PAD >= 0) & (xx + k - PAD < W)
                     for k in range(KS)]).astype(jnp.float32)            # (7, L)
    my7 = jnp.stack([(yy + k - PAD >= 0) & (yy + k - PAD < H)
                     for k in range(KS)]).astype(jnp.float32)            # (7, L)
    m3 = jnp.stack([(yy + ky - 1 >= 0) & (yy + ky - 1 < H) &
                    (xx + kx - 1 >= 0) & (xx + kx - 1 < W)
                    for ky in range(3) for kx in range(3)]).astype(jnp.float32)  # (9, L)

    def const_spec(shape):
        nd = len(shape)
        return pl.BlockSpec(shape, lambda b, _nd=nd: (0,) * _nd)

    out = pl.pallas_call(
        functools.partial(_mrf_kernel, W),
        out_shape=jax.ShapeDtypeStruct((NB, RF, L), jnp.float32),
        grid=(NB,),
        in_specs=[pl.BlockSpec((1, C, RF, L), lambda b: (b, 0, 0, 0)),
                  const_spec((KS, L)),
                  const_spec((KS, L)),
                  const_spec((9, L)),
                  const_spec((KS * G8, KS * G8)),
                  const_spec((HID, 9 * G8)),
                  const_spec((HID, 1)),
                  const_spec((9 * G8, HID)),
                  const_spec((RF, 1))],
        out_specs=pl.BlockSpec((1, RF, L), lambda b: (b, 0, 0)),
        compiler_params=pltpu.CompilerParams(dimension_semantics=("parallel",)),
    )(x, mx7, my7, m3, wc_bd, w1_aug, shift1, w2_rows, b2_col)

    # Unpack (NB, RF, Bp*HW) -> NCHW (pure layout plumbing, outside the kernel).
    return (out.reshape(NB, RF, Bp, HW)
               .transpose(0, 2, 1, 3)
               .reshape(B, RF, H, W))


def _reference(x_list, params):
    """Pure-JAX (XLA) reference of the PyTorch forward, NCHW."""
    wc1, w1, b1, gamma, beta, rmean, rvar, w2, b2 = params

    def conv(x, w, b=None, pad=0):
        out = jax.lax.conv_general_dilated(
            x, w, window_strides=(1, 1), padding=[(pad, pad), (pad, pad)],
            dimension_numbers=('NCHW', 'OIHW', 'NCHW'),
            precision=jax.lax.Precision.HIGHEST)
        if b is not None:
            out = out + b[None, :, None, None]
        return out

    def spatial_norm(x):
        avg = jnp.mean(x, axis=1, keepdims=True)
        mx = jnp.max(x, axis=1, keepdims=True)
        return conv(jnp.concatenate([avg, mx], axis=1), wc1, pad=PAD)

    s = jnp.concatenate([spatial_norm(x) for x in x_list], axis=1)
    h = conv(s, w1, b1, pad=1)
    h = (h - rmean[None, :, None, None]) / jnp.sqrt(rvar[None, :, None, None] + BN_EPS)
    h = h * gamma[None, :, None, None] + beta[None, :, None, None]
    h = jnp.maximum(h, 0.0)
    o = conv(h, w2, b2, pad=1)
    return jax.nn.softmax(o, axis=1)


if __name__ == "__main__":
    B, C, H, W = 2, 4, 16, 16

    keys = jax.random.split(jax.random.PRNGKey(0), RF + 9)
    x_list = [jax.random.normal(keys[i], (B, C, H, W), jnp.float32) for i in range(RF)]
    kp = keys[RF:]
    params = (
        0.1 * jax.random.normal(kp[0], (1, 2, KS, KS), jnp.float32),         # conv1.weight
        0.1 * jax.random.normal(kp[1], (HID, RF, 3, 3), jnp.float32),        # attention[0].weight
        0.1 * jax.random.normal(kp[2], (HID,), jnp.float32),                 # attention[0].bias
        1.0 + 0.1 * jax.random.normal(kp[3], (HID,), jnp.float32),           # BN gamma
        0.1 * jax.random.normal(kp[4], (HID,), jnp.float32),                 # BN beta
        0.1 * jax.random.normal(kp[5], (HID,), jnp.float32),                 # BN running_mean
        1.0 + 0.1 * jnp.abs(jax.random.normal(kp[6], (HID,), jnp.float32)),  # BN running_var
        0.1 * jax.random.normal(kp[7], (RF, HID, 3, 3), jnp.float32),        # attention[3].weight
        0.1 * jax.random.normal(kp[8], (RF,), jnp.float32),                  # attention[3].bias
    )

    out = jax.block_until_ready(mrf_attention_forward(x_list, params))
    assert out.shape == (B, RF, H, W), out.shape

    ref = jax.block_until_ready(_reference(x_list, params))
    err = float(jnp.max(jnp.abs(out - ref)))
    assert err < 2e-2, f"max |pallas - reference| = {err}"
    print("KERNEL_OK")
</pallas_src>

<mosaic_0001>
module attributes {stable_mosaic.version = 11 : i64} {
  func.func @_mrf_kernel(%arg0: i32, %arg1: memref<1x4x3x512xf32, #tpu.memory_space<vmem>>, %arg2: memref<7x512xf32, #tpu.memory_space<vmem>>, %arg3: memref<7x512xf32, #tpu.memory_space<vmem>>, %arg4: memref<9x512xf32, #tpu.memory_space<vmem>>, %arg5: memref<56x56xf32, #tpu.memory_space<vmem>>, %arg6: memref<48x72xf32, #tpu.memory_space<vmem>>, %arg7: memref<48x1xf32, #tpu.memory_space<vmem>>, %arg8: memref<72x48xf32, #tpu.memory_space<vmem>>, %arg9: memref<3x1xf32, #tpu.memory_space<vmem>>, %arg10: memref<1x3x512xf32, #tpu.memory_space<vmem>>) attributes {dimension_semantics = [#tpu.dimension_semantics<parallel>], iteration_bounds = array<i64: 1>, scalar_prefetch = 0 : i64, scratch_operands = 0 : i64, tpu.core_type = #tpu.core_type<tc>, window_params = [{transform_indices = @transform_0, window_bounds = array<i64: 1, 4, 3, 512>}, {pipeline_mode = #tpu.pipeline_mode<synchronous>, transform_indices = @transform_1, window_bounds = array<i64: 7, 512>}, {pipeline_mode = #tpu.pipeline_mode<synchronous>, transform_indices = @transform_2, window_bounds = array<i64: 7, 512>}, {pipeline_mode = #tpu.pipeline_mode<synchronous>, transform_indices = @transform_3, window_bounds = array<i64: 9, 512>}, {pipeline_mode = #tpu.pipeline_mode<synchronous>, transform_indices = @transform_4, window_bounds = array<i64: 56, 56>}, {pipeline_mode = #tpu.pipeline_mode<synchronous>, transform_indices = @transform_5, window_bounds = array<i64: 48, 72>}, {pipeline_mode = #tpu.pipeline_mode<synchronous>, transform_indices = @transform_6, window_bounds = array<i64: 48, 1>}, {pipeline_mode = #tpu.pipeline_mode<synchronous>, transform_indices = @transform_7, window_bounds = array<i64: 72, 48>}, {pipeline_mode = #tpu.pipeline_mode<synchronous>, transform_indices = @transform_8, window_bounds = array<i64: 3, 1>}, {transform_indices = @transform_9, window_bounds = array<i64: 1, 3, 512>}]} {
    %c0 = arith.constant 0 : index
    %c0_0 = arith.constant 0 : index
    %c0_1 = arith.constant 0 : index
    %c0_2 = arith.constant 0 : index
    %0 = vector.load %arg1[%c0, %c0_0, %c0_1, %c0_2] : memref<1x4x3x512xf32, #tpu.memory_space<vmem>>, vector<1x4x3x512xf32>
    %1 = vector.shape_cast %0 : vector<1x4x3x512xf32> to vector<4x3x512xf32>
    %2 = vector.extract_strided_slice %1 {offsets = [0, 0, 0], sizes = [1, 3, 512], strides = [1, 1, 1]} : vector<4x3x512xf32> to vector<1x3x512xf32>
    %3 = vector.shape_cast %2 : vector<1x3x512xf32> to vector<3x512xf32>
    %4 = vector.extract_strided_slice %1 {offsets = [0, 0, 0], sizes = [1, 3, 512], strides = [1, 1, 1]} : vector<4x3x512xf32> to vector<1x3x512xf32>
    %5 = vector.shape_cast %4 : vector<1x3x512xf32> to vector<3x512xf32>
    %6 = vector.extract_strided_slice %1 {offsets = [1, 0, 0], sizes = [1, 3, 512], strides = [1, 1, 1]} : vector<4x3x512xf32> to vector<1x3x512xf32>
    %7 = vector.shape_cast %6 : vector<1x3x512xf32> to vector<3x512xf32>
    %8 = arith.addf %3, %7 : vector<3x512xf32>
    %9 = vector.extract_strided_slice %1 {offsets = [1, 0, 0], sizes = [1, 3, 512], strides = [1, 1, 1]} : vector<4x3x512xf32> to vector<1x3x512xf32>
    %10 = vector.shape_cast %9 : vector<1x3x512xf32> to vector<3x512xf32>
    %11 = arith.maximumf %5, %10 : vector<3x512xf32>
    %12 = vector.extract_strided_slice %1 {offsets = [2, 0, 0], sizes = [1, 3, 512], strides = [1, 1, 1]} : vector<4x3x512xf32> to vector<1x3x512xf32>
    %13 = vector.shape_cast %12 : vector<1x3x512xf32> to vector<3x512xf32>
    %14 = arith.addf %8, %13 : vector<3x512xf32>
    %15 = vector.extract_strided_slice %1 {offsets = [2, 0, 0], sizes = [1, 3, 512], strides = [1, 1, 1]} : vector<4x3x512xf32> to vector<1x3x512xf32>
    %16 = vector.shape_cast %15 : vector<1x3x512xf32> to vector<3x512xf32>
    %17 = arith.maximumf %11, %16 : vector<3x512xf32>
    %18 = vector.extract_strided_slice %1 {offsets = [3, 0, 0], sizes = [1, 3, 512], strides = [1, 1, 1]} : vector<4x3x512xf32> to vector<1x3x512xf32>
    %19 = vector.shape_cast %18 : vector<1x3x512xf32> to vector<3x512xf32>
    %20 = arith.addf %14, %19 : vector<3x512xf32>
    %21 = vector.extract_strided_slice %1 {offsets = [3, 0, 0], sizes = [1, 3, 512], strides = [1, 1, 1]} : vector<4x3x512xf32> to vector<1x3x512xf32>
    %22 = vector.shape_cast %21 : vector<1x3x512xf32> to vector<3x512xf32>
    %23 = arith.maximumf %17, %22 : vector<3x512xf32>
    %cst = arith.constant 2.500000e-01 : f32
    %24 = vector.broadcast %cst : f32 to vector<3x512xf32>
    %25 = arith.mulf %20, %24 : vector<3x512xf32>
    %cst_3 = arith.constant 0.000000e+00 : f32
    %26 = vector.broadcast %cst_3 : f32 to vector<2x512xf32>
    %27 = tpu.concatenate %25, %23, %26 in 0 : vector<3x512xf32>, vector<3x512xf32>, vector<2x512xf32> -> vector<8x512xf32>
    %c3_i32 = arith.constant 3 : i32
    %28 = tpu.dynamic_rotate %27 by %c3_i32 dim 1 : vector<8x512xf32>, i32 -> vector<8x512xf32>
    %c0_4 = arith.constant 0 : index
    %c0_5 = arith.constant 0 : index
    %29 = vector.load %arg2[%c0_4, %c0_5] : memref<7x512xf32, #tpu.memory_space<vmem>>, vector<1x512xf32>
    %30 = vector.broadcast %29 : vector<1x512xf32> to vector<8x512xf32>
    %31 = arith.mulf %28, %30 : vector<8x512xf32>
    %c2_i32 = arith.constant 2 : i32
    %32 = tpu.dynamic_rotate %27 by %c2_i32 dim 1 : vector<8x512xf32>, i32 -> vector<8x512xf32>
    %c1 = arith.constant 1 : index
    %c0_6 = arith.constant 0 : index
    %33 = vector.load %arg2[%c1, %c0_6] : memref<7x512xf32, #tpu.memory_space<vmem>>, vector<1x512xf32>
    %34 = vector.broadcast %33 : vector<1x512xf32> to vector<8x512xf32>
    %35 = arith.mulf %32, %34 : vector<8x512xf32>
    %c1_i32 = arith.constant 1 : i32
    %36 = tpu.dynamic_rotate %27 by %c1_i32 dim 1 : vector<8x512xf32>, i32 -> vector<8x512xf32>
    %c2 = arith.constant 2 : index
    %c0_7 = arith.constant 0 : index
    %37 = vector.load %arg2[%c2, %c0_7] : memref<7x512xf32, #tpu.memory_space<vmem>>, vector<1x512xf32>
    %38 = vector.broadcast %37 : vector<1x512xf32> to vector<8x512xf32>
    %39 = arith.mulf %36, %38 : vector<8x512xf32>
    %c511_i32 = arith.constant 511 : i32
    %40 = tpu.dynamic_rotate %27 by %c511_i32 dim 1 : vector<8x512xf32>, i32 -> vector<8x512xf32>
    %c4 = arith.constant 4 : index
    %c0_8 = arith.constant 0 : index
    %41 = vector.load %arg2[%c4, %c0_8] : memref<7x512xf32, #tpu.memory_space<vmem>>, vector<1x512xf32>
    %42 = vector.broadcast %41 : vector<1x512xf32> to vector<8x512xf32>
    %43 = arith.mulf %40, %42 : vector<8x512xf32>
    %c510_i32 = arith.constant 510 : i32
    %44 = tpu.dynamic_rotate %27 by %c510_i32 dim 1 : vector<8x512xf32>, i32 -> vector<8x512xf32>
    %c5 = arith.constant 5 : index
    %c0_9 = arith.constant 0 : index
    %45 = vector.load %arg2[%c5, %c0_9] : memref<7x512xf32, #tpu.memory_space<vmem>>, vector<1x512xf32>
    %46 = vector.broadcast %45 : vector<1x512xf32> to vector<8x512xf32>
    %47 = arith.mulf %44, %46 : vector<8x512xf32>
    %c509_i32 = arith.constant 509 : i32
    %48 = tpu.dynamic_rotate %27 by %c509_i32 dim 1 : vector<8x512xf32>, i32 -> vector<8x512xf32>
    %c6 = arith.constant 6 : index
    %c0_10 = arith.constant 0 : index
    %49 = vector.load %arg2[%c6, %c0_10] : memref<7x512xf32, #tpu.memory_space<vmem>>, vector<1x512xf32>
    %50 = vector.broadcast %49 : vector<1x512xf32> to vector<8x512xf32>
    %51 = arith.mulf %48, %50 : vector<8x512xf32>
    %52 = tpu.concatenate %31, %35, %39, %27, %43, %47, %51 in 0 : vector<8x512xf32>, vector<8x512xf32>, vector<8x512xf32>, vector<8x512xf32>, vector<8x512xf32>, vector<8x512xf32>, vector<8x512xf32> -> vector<56x512xf32>
    %c0_11 = arith.constant 0 : index
    %c0_12 = arith.constant 0 : index
    %53 = vector.load %arg5[%c0_11, %c0_12] : memref<56x56xf32, #tpu.memory_space<vmem>>, vector<56x56xf32>
    %cst_13 = arith.constant dense<0.000000e+00> : vector<56x512xf32>
    %54 = tpu.matmul %53, %52, %cst_13 {dimension_numbers = #tpu.dot_dimension_numbers<[1], [0], [0], [1], [0, 0, 1, 1], [], []>} : vector<56x56xf32>, vector<56x512xf32>, vector<56x512xf32> -> vector<56x512xf32>
    %55 = vector.extract_strided_slice %54 {offsets = [0, 0], sizes = [8, 512], strides = [1, 1]} : vector<56x512xf32> to vector<8x512xf32>
    %c48_i32 = arith.constant 48 : i32
    %56 = tpu.dynamic_rotate %55 by %c48_i32 dim 1 : vector<8x512xf32>, i32 -> vector<8x512xf32>
    %c0_14 = arith.constant 0 : index
    %c0_15 = arith.constant 0 : index
    %57 = vector.load %arg3[%c0_14, %c0_15] : memref<7x512xf32, #tpu.memory_space<vmem>>, vector<1x512xf32>
    %58 = vector.broadcast %57 : vector<1x512xf32> to vector<8x512xf32>
    %59 = arith.mulf %56, %58 : vector<8x512xf32>
    %60 = vector.extract_strided_slice %54 {offsets = [8, 0], sizes = [8, 512], strides = [1, 1]} : vector<56x512xf32> to vector<8x512xf32>
    %c32_i32 = arith.constant 32 : i32
    %61 = tpu.dynamic_rotate %60 by %c32_i32 dim 1 : vector<8x512xf32>, i32 -> vector<8x512xf32>
    %c1_16 = arith.constant 1 : index
    %c0_17 = arith.constant 0 : index
    %62 = vector.load %arg3[%c1_16, %c0_17] : memref<7x512xf32, #tpu.memory_space<vmem>>, vector<1x512xf32>
    %63 = vector.broadcast %62 : vector<1x512xf32> to vector<8x512xf32>
    %64 = arith.mulf %61, %63 : vector<8x512xf32>
    %65 = arith.addf %59, %64 : vector<8x512xf32>
    %66 = vector.extract_strided_slice %54 {offsets = [16, 0], sizes = [8, 512], strides = [1, 1]} : vector<56x512xf32> to vector<8x512xf32>
    %c16_i32 = arith.constant 16 : i32
    %67 = tpu.dynamic_rotate %66 by %c16_i32 dim 1 : vector<8x512xf32>, i32 -> vector<8x512xf32>
    %c2_18 = arith.constant 2 : index
    %c0_19 = arith.constant 0 : index
    %68 = vector.load %arg3[%c2_18, %c0_19] : memref<7x512xf32, #tpu.memory_space<vmem>>, vector<1x512xf32>
    %69 = vector.broadcast %68 : vector<1x512xf32> to vector<8x512xf32>
    %70 = arith.mulf %67, %69 : vector<8x512xf32>
    %71 = arith.addf %65, %70 : vector<8x512xf32>
    %72 = vector.extract_strided_slice %54 {offsets = [24, 0], sizes = [8, 512], strides = [1, 1]} : vector<56x512xf32> to vector<8x512xf32>
    %73 = arith.addf %71, %72 : vector<8x512xf32>
    %74 = vector.extract_strided_slice %54 {offsets = [32, 0], sizes = [8, 512], strides = [1, 1]} : vector<56x512xf32> to vector<8x512xf32>
    %c496_i32 = arith.constant 496 : i32
    %75 = tpu.dynamic_rotate %74 by %c496_i32 dim 1 : vector<8x512xf32>, i32 -> vector<8x512xf32>
    %c4_20 = arith.constant 4 : index
    %c0_21 = arith.constant 0 : index
    %76 = vector.load %arg3[%c4_20, %c0_21] : memref<7x512xf32, #tpu.memory_space<vmem>>, vector<1x512xf32>
    %77 = vector.broadcast %76 : vector<1x512xf32> to vector<8x512xf32>
    %78 = arith.mulf %75, %77 : vector<8x512xf32>
    %79 = arith.addf %73, %78 : vector<8x512xf32>
    %80 = vector.extract_strided_slice %54 {offsets = [40, 0], sizes = [8, 512], strides = [1, 1]} : vector<56x512xf32> to vector<8x512xf32>
    %c480_i32 = arith.constant 480 : i32
    %81 = tpu.dynamic_rotate %80 by %c480_i32 dim 1 : vector<8x512xf32>, i32 -> vector<8x512xf32>
    %c5_22 = arith.constant 5 : index
    %c0_23 = arith.constant 0 : index
    %82 = vector.load %arg3[%c5_22, %c0_23] : memref<7x512xf32, #tpu.memory_space<vmem>>, vector<1x512xf32>
    %83 = vector.broadcast %82 : vector<1x512xf32> to vector<8x512xf32>
    %84 = arith.mulf %81, %83 : vector<8x512xf32>
    %85 = arith.addf %79, %84 : vector<8x512xf32>
    %86 = vector.extract_strided_slice %54 {offsets = [48, 0], sizes = [8, 512], strides = [1, 1]} : vector<56x512xf32> to vector<8x512xf32>
    %c464_i32 = arith.constant 464 : i32
    %87 = tpu.dynamic_rotate %86 by %c464_i32 dim 1 : vector<8x512xf32>, i32 -> vector<8x512xf32>
    %c6_24 = arith.constant 6 : index
    %c0_25 = arith.constant 0 : index
    %88 = vector.load %arg3[%c6_24, %c0_25] : memref<7x512xf32, #tpu.memory_space<vmem>>, vector<1x512xf32>
    %89 = vector.broadcast %88 : vector<1x512xf32> to vector<8x512xf32>
    %90 = arith.mulf %87, %89 : vector<8x512xf32>
    %91 = arith.addf %85, %90 : vector<8x512xf32>
    %c17_i32 = arith.constant 17 : i32
    %92 = tpu.dynamic_rotate %91 by %c17_i32 dim 1 : vector<8x512xf32>, i32 -> vector<8x512xf32>
    %c0_26 = arith.constant 0 : index
    %c0_27 = arith.constant 0 : index
    %93 = vector.load %arg4[%c0_26, %c0_27] : memref<9x512xf32, #tpu.memory_space<vmem>>, vector<1x512xf32>
    %94 = vector.broadcast %93 : vector<1x512xf32> to vector<8x512xf32>
    %95 = arith.mulf %92, %94 : vector<8x512xf32>
    %c16_i32_28 = arith.constant 16 : i32
    %96 = tpu.dynamic_rotate %91 by %c16_i32_28 dim 1 : vector<8x512xf32>, i32 -> vector<8x512xf32>
    %c1_29 = arith.constant 1 : index
    %c0_30 = arith.constant 0 : index
    %97 = vector.load %arg4[%c1_29, %c0_30] : memref<9x512xf32, #tpu.memory_space<vmem>>, vector<1x512xf32>
    %98 = vector.broadcast %97 : vector<1x512xf32> to vector<8x512xf32>
    %99 = arith.mulf %96, %98 : vector<8x512xf32>
    %c15_i32 = arith.constant 15 : i32
    %100 = tpu.dynamic_rotate %91 by %c15_i32 dim 1 : vector<8x512xf32>, i32 -> vector<8x512xf32>
    %c2_31 = arith.constant 2 : index
    %c0_32 = arith.constant 0 : index
    %101 = vector.load %arg4[%c2_31, %c0_32] : memref<9x512xf32, #tpu.memory_space<vmem>>, vector<1x512xf32>
    %102 = vector.broadcast %101 : vector<1x512xf32> to vector<8x512xf32>
    %103 = arith.mulf %100, %102 : vector<8x512xf32>
    %c1_i32_33 = arith.constant 1 : i32
    %104 = tpu.dynamic_rotate %91 by %c1_i32_33 dim 1 : vector<8x512xf32>, i32 -> vector<8x512xf32>
    %c3 = arith.constant 3 : index
    %c0_34 = arith.constant 0 : index
    %105 = vector.load %arg4[%c3, %c0_34] : memref<9x512xf32, #tpu.memory_space<vmem>>, vector<1x512xf32>
    %106 = vector.broadcast %105 : vector<1x512xf32> to vector<8x512xf32>
    %107 = arith.mulf %104, %106 : vector<8x512xf32>
    %c511_i32_35 = arith.constant 511 : i32
    %108 = tpu.dynamic_rotate %91 by %c511_i32_35 dim 1 : vector<8x512xf32>, i32 -> vector<8x512xf32>
    %c5_36 = arith.constant 5 : index
    %c0_37 = arith.constant 0 : index
    %109 = vector.load %arg4[%c5_36, %c0_37] : memref<9x512xf32, #tpu.memory_space<vmem>>, vector<1x512xf32>
    %110 = vector.broadcast %109 : vector<1x512xf32> to vector<8x512xf32>
    %111 = arith.mulf %108, %110 : vector<8x512xf32>
    %c497_i32 = arith.constant 497 : i32
    %112 = tpu.dynamic_rotate %91 by %c497_i32 dim 1 : vector<8x512xf32>, i32 -> vector<8x512xf32>
    %c6_38 = arith.constant 6 : index
    %c0_39 = arith.constant 0 : index
    %113 = vector.load %arg4[%c6_38, %c0_39] : memref<9x512xf32, #tpu.memory_space<vmem>>, vector<1x512xf32>
    %114 = vector.broadcast %113 : vector<1x512xf32> to vector<8x512xf32>
    %115 = arith.mulf %112, %114 : vector<8x512xf32>
    %c496_i32_40 = arith.constant 496 : i32
    %116 = tpu.dynamic_rotate %91 by %c496_i32_40 dim 1 : vector<8x512xf32>, i32 -> vector<8x512xf32>
    %c7 = arith.constant 7 : index
    %c0_41 = arith.constant 0 : index
    %117 = vector.load %arg4[%c7, %c0_41] : memref<9x512xf32, #tpu.memory_space<vmem>>, vector<1x512xf32>
    %118 = vector.broadcast %117 : vector<1x512xf32> to vector<8x512xf32>
    %119 = arith.mulf %116, %118 : vector<8x512xf32>
    %c495_i32 = arith.constant 495 : i32
    %120 = tpu.dynamic_rotate %91 by %c495_i32 dim 1 : vector<8x512xf32>, i32 -> vector<8x512xf32>
    %c8 = arith.constant 8 : index
    %c0_42 = arith.constant 0 : index
    %121 = vector.load %arg4[%c8, %c0_42] : memref<9x512xf32, #tpu.memory_space<vmem>>, vector<1x512xf32>
    %122 = vector.broadcast %121 : vector<1x512xf32> to vector<8x512xf32>
    %123 = arith.mulf %120, %122 : vector<8x512xf32>
    %124 = tpu.concatenate %95, %99, %103, %107, %91, %111, %115, %119, %123 in 0 : vector<8x512xf32>, vector<8x512xf32>, vector<8x512xf32>, vector<8x512xf32>, vector<8x512xf32>, vector<8x512xf32>, vector<8x512xf32>, vector<8x512xf32>, vector<8x512xf32> -> vector<72x512xf32>
    %c0_43 = arith.constant 0 : index
    %c0_44 = arith.constant 0 : index
    %125 = vector.load %arg6[%c0_43, %c0_44] : memref<48x72xf32, #tpu.memory_space<vmem>>, vector<48x72xf32>
    %cst_45 = arith.constant dense<0.000000e+00> : vector<48x512xf32>
    %126 = tpu.matmul %125, %124, %cst_45 {dimension_numbers = #tpu.dot_dimension_numbers<[1], [0], [0], [1], [0, 0, 1, 1], [], []>} : vector<48x72xf32>, vector<72x512xf32>, vector<48x512xf32> -> vector<48x512xf32>
    %c0_46 = arith.constant 0 : index
    %c0_47 = arith.constant 0 : index
    %127 = vector.load %arg7[%c0_46, %c0_47] : memref<48x1xf32, #tpu.memory_space<vmem>>, vector<48x1xf32>
    %128 = vector.broadcast %127 : vector<48x1xf32> to vector<48x512xf32>
    %129 = arith.addf %126, %128 : vector<48x512xf32>
    %cst_48 = arith.constant 0.000000e+00 : f32
    %130 = vector.broadcast %cst_48 : f32 to vector<48x512xf32>
    %131 = arith.maximumf %129, %130 : vector<48x512xf32>
    %c0_49 = arith.constant 0 : index
    %c0_50 = arith.constant 0 : index
    %132 = vector.load %arg8[%c0_49, %c0_50] : memref<72x48xf32, #tpu.memory_space<vmem>>, vector<72x48xf32>
    %cst_51 = arith.constant dense<0.000000e+00> : vector<72x512xf32>
    %133 = tpu.matmul %132, %131, %cst_51 {dimension_numbers = #tpu.dot_dimension_numbers<[1], [0], [0], [1], [0, 0, 1, 1], [], []>} : vector<72x48xf32>, vector<48x512xf32>, vector<72x512xf32> -> vector<72x512xf32>
    %134 = vector.extract_strided_slice %133 {offsets = [0, 0], sizes = [8, 512], strides = [1, 1]} : vector<72x512xf32> to vector<8x512xf32>
    %c17_i32_52 = arith.constant 17 : i32
    %135 = tpu.dynamic_rotate %134 by %c17_i32_52 dim 1 : vector<8x512xf32>, i32 -> vector<8x512xf32>
    %c0_53 = arith.constant 0 : index
    %c0_54 = arith.constant 0 : index
    %136 = vector.load %arg4[%c0_53, %c0_54] : memref<9x512xf32, #tpu.memory_space<vmem>>, vector<1x512xf32>
    %137 = vector.broadcast %136 : vector<1x512xf32> to vector<8x512xf32>
    %138 = arith.mulf %135, %137 : vector<8x512xf32>
    %139 = vector.extract_strided_slice %133 {offsets = [8, 0], sizes = [8, 512], strides = [1, 1]} : vector<72x512xf32> to vector<8x512xf32>
    %c16_i32_55 = arith.constant 16 : i32
    %140 = tpu.dynamic_rotate %139 by %c16_i32_55 dim 1 : vector<8x512xf32>, i32 -> vector<8x512xf32>
    %c1_56 = arith.constant 1 : index
    %c0_57 = arith.constant 0 : index
    %141 = vector.load %arg4[%c1_56, %c0_57] : memref<9x512xf32, #tpu.memory_space<vmem>>, vector<1x512xf32>
    %142 = vector.broadcast %141 : vector<1x512xf32> to vector<8x512xf32>
    %143 = arith.mulf %140, %142 : vector<8x512xf32>
    %144 = arith.addf %138, %143 : vector<8x512xf32>
    %145 = vector.extract_strided_slice %133 {offsets = [16, 0], sizes = [8, 512], strides = [1, 1]} : vector<72x512xf32> to vector<8x512xf32>
    %c15_i32_58 = arith.constant 15 : i32
    %146 = tpu.dynamic_rotate %145 by %c15_i32_58 dim 1 : vector<8x512xf32>, i32 -> vector<8x512xf32>
    %c2_59 = arith.constant 2 : index
    %c0_60 = arith.constant 0 : index
    %147 = vector.load %arg4[%c2_59, %c0_60] : memref<9x512xf32, #tpu.memory_space<vmem>>, vector<1x512xf32>
    %148 = vector.broadcast %147 : vector<1x512xf32> to vector<8x512xf32>
    %149 = arith.mulf %146, %148 : vector<8x512xf32>
    %150 = arith.addf %144, %149 : vector<8x512xf32>
    %151 = vector.extract_strided_slice %133 {offsets = [24, 0], sizes = [8, 512], strides = [1, 1]} : vector<72x512xf32> to vector<8x512xf32>
    %c1_i32_61 = arith.constant 1 : i32
    %152 = tpu.dynamic_rotate %151 by %c1_i32_61 dim 1 : vector<8x512xf32>, i32 -> vector<8x512xf32>
    %c3_62 = arith.constant 3 : index
    %c0_63 = arith.constant 0 : index
    %153 = vector.load %arg4[%c3_62, %c0_63] : memref<9x512xf32, #tpu.memory_space<vmem>>, vector<1x512xf32>
    %154 = vector.broadcast %153 : vector<1x512xf32> to vector<8x512xf32>
    %155 = arith.mulf %152, %154 : vector<8x512xf32>
    %156 = arith.addf %150, %155 : vector<8x512xf32>
    %157 = vector.extract_strided_slice %133 {offsets = [32, 0], sizes = [8, 512], strides = [1, 1]} : vector<72x512xf32> to vector<8x512xf32>
    %158 = arith.addf %156, %157 : vector<8x512xf32>
    %159 = vector.extract_strided_slice %133 {offsets = [40, 0], sizes = [8, 512], strides = [1, 1]} : vector<72x512xf32> to vector<8x512xf32>
    %c511_i32_64 = arith.constant 511 : i32
    %160 = tpu.dynamic_rotate %159 by %c511_i32_64 dim 1 : vector<8x512xf32>, i32 -> vector<8x512xf32>
    %c5_65 = arith.constant 5 : index
    %c0_66 = arith.constant 0 : index
    %161 = vector.load %arg4[%c5_65, %c0_66] : memref<9x512xf32, #tpu.memory_space<vmem>>, vector<1x512xf32>
    %162 = vector.broadcast %161 : vector<1x512xf32> to vector<8x512xf32>
    %163 = arith.mulf %160, %162 : vector<8x512xf32>
    %164 = arith.addf %158, %163 : vector<8x512xf32>
    %165 = vector.extract_strided_slice %133 {offsets = [48, 0], sizes = [8, 512], strides = [1, 1]} : vector<72x512xf32> to vector<8x512xf32>
    %c497_i32_67 = arith.constant 497 : i32
    %166 = tpu.dynamic_rotate %165 by %c497_i32_67 dim 1 : vector<8x512xf32>, i32 -> vector<8x512xf32>
    %c6_68 = arith.constant 6 : index
    %c0_69 = arith.constant 0 : index
    %167 = vector.load %arg4[%c6_68, %c0_69] : memref<9x512xf32, #tpu.memory_space<vmem>>, vector<1x512xf32>
    %168 = vector.broadcast %167 : vector<1x512xf32> to vector<8x512xf32>
    %169 = arith.mulf %166, %168 : vector<8x512xf32>
    %170 = arith.addf %164, %169 : vector<8x512xf32>
    %171 = vector.extract_strided_slice %133 {offsets = [56, 0], sizes = [8, 512], strides = [1, 1]} : vector<72x512xf32> to vector<8x512xf32>
    %c496_i32_70 = arith.constant 496 : i32
    %172 = tpu.dynamic_rotate %171 by %c496_i32_70 dim 1 : vector<8x512xf32>, i32 -> vector<8x512xf32>
    %c7_71 = arith.constant 7 : index
    %c0_72 = arith.constant 0 : index
    %173 = vector.load %arg4[%c7_71, %c0_72] : memref<9x512xf32, #tpu.memory_space<vmem>>, vector<1x512xf32>
    %174 = vector.broadcast %173 : vector<1x512xf32> to vector<8x512xf32>
    %175 = arith.mulf %172, %174 : vector<8x512xf32>
    %176 = arith.addf %170, %175 : vector<8x512xf32>
    %177 = vector.extract_strided_slice %133 {offsets = [64, 0], sizes = [8, 512], strides = [1, 1]} : vector<72x512xf32> to vector<8x512xf32>
    %c495_i32_73 = arith.constant 495 : i32
    %178 = tpu.dynamic_rotate %177 by %c495_i32_73 dim 1 : vector<8x512xf32>, i32 -> vector<8x512xf32>
    %c8_74 = arith.constant 8 : index
    %c0_75 = arith.constant 0 : index
    %179 = vector.load %arg4[%c8_74, %c0_75] : memref<9x512xf32, #tpu.memory_space<vmem>>, vector<1x512xf32>
    %180 = vector.broadcast %179 : vector<1x512xf32> to vector<8x512xf32>
    %181 = arith.mulf %178, %180 : vector<8x512xf32>
    %182 = arith.addf %176, %181 : vector<8x512xf32>
    %183 = vector.extract_strided_slice %182 {offsets = [0, 0], sizes = [3, 512], strides = [1, 1]} : vector<8x512xf32> to vector<3x512xf32>
    %c0_76 = arith.constant 0 : index
    %c0_77 = arith.constant 0 : index
    %184 = vector.load %arg9[%c0_76, %c0_77] : memref<3x1xf32, #tpu.memory_space<vmem>>, vector<3x1xf32>
    %185 = vector.broadcast %184 : vector<3x1xf32> to vector<3x512xf32>
    %186 = arith.addf %183, %185 : vector<3x512xf32>
    %cst_78 = arith.constant dense<0xFF800000> : vector<512xf32>
    %187 = vector.multi_reduction <maximumf>, %186, %cst_78 [0] : vector<3x512xf32> to vector<512xf32>
    %188 = vector.shape_cast %187 : vector<512xf32> to vector<1x512xf32>
    %189 = vector.broadcast %188 : vector<1x512xf32> to vector<3x512xf32>
    %190 = arith.subf %186, %189 : vector<3x512xf32>
    %191 = math.exp %190 : vector<3x512xf32>
    %cst_79 = arith.constant dense<0.000000e+00> : vector<512xf32>
    %192 = vector.multi_reduction <add>, %191, %cst_79 [0] : vector<3x512xf32> to vector<512xf32>
    %193 = vector.shape_cast %192 : vector<512xf32> to vector<1x512xf32>
    %194 = tpu.reciprocal %193 {approx = true} : vector<1x512xf32> -> vector<1x512xf32>
    %195 = vector.broadcast %194 : vector<1x512xf32> to vector<3x512xf32>
    %196 = arith.mulf %191, %195 : vector<3x512xf32>
    %c0_80 = arith.constant 0 : index
    %c0_81 = arith.constant 0 : index
    %c0_82 = arith.constant 0 : index
    %197 = vector.load %arg10[%c0_80, %c0_81, %c0_82] : memref<1x3x512xf32, #tpu.memory_space<vmem>>, vector<1x3x512xf32>
    %198 = vector.shape_cast %197 : vector<1x3x512xf32> to vector<3x512xf32>
    %199 = vector.shape_cast %196 : vector<3x512xf32> to vector<1x3x512xf32>
    tpu.vector_store %arg10[%c0_80, %c0_81, %c0_82], %199 {strides = array<i32>} : memref<1x3x512xf32, #tpu.memory_space<vmem>>, vector<1x3x512xf32>,
    return
  }
  func.func @transform_0(%arg0: i32) -> (i32, i32, i32, i32) {
    %c0_i32 = arith.constant 0 : i32
    %c0_i32_0 = arith.constant 0 : i32
    %c0_i32_1 = arith.constant 0 : i32
    %c0_i32_2 = arith.constant 0 : i32
    return %arg0, %c0_i32, %c0_i32_0, %c0_i32_1 : i32, i32, i32, i32
  }
  func.func @transform_1(%arg0: i32) -> (i32, i32) {
    %c0_i32 = arith.constant 0 : i32
    %c0_i32_0 = arith.constant 0 : i32
    %c0_i32_1 = arith.constant 0 : i32
    return %c0_i32, %c0_i32_0 : i32, i32
  }
  func.func @transform_2(%arg0: i32) -> (i32, i32) {
    %c0_i32 = arith.constant 0 : i32
    %c0_i32_0 = arith.constant 0 : i32
    %c0_i32_1 = arith.constant 0 : i32
    return %c0_i32, %c0_i32_0 : i32, i32
  }
  func.func @transform_3(%arg0: i32) -> (i32, i32) {
    %c0_i32 = arith.constant 0 : i32
    %c0_i32_0 = arith.constant 0 : i32
    %c0_i32_1 = arith.constant 0 : i32
    return %c0_i32, %c0_i32_0 : i32, i32
  }
  func.func @transform_4(%arg0: i32) -> (i32, i32) {
    %c0_i32 = arith.constant 0 : i32
    %c0_i32_0 = arith.constant 0 : i32
    %c0_i32_1 = arith.constant 0 : i32
    return %c0_i32, %c0_i32_0 : i32, i32
  }
  func.func @transform_5(%arg0: i32) -> (i32, i32) {
    %c0_i32 = arith.constant 0 : i32
    %c0_i32_0 = arith.constant 0 : i32
    %c0_i32_1 = arith.constant 0 : i32
    return %c0_i32, %c0_i32_0 : i32, i32
  }
  func.func @transform_6(%arg0: i32) -> (i32, i32) {
    %c0_i32 = arith.constant 0 : i32
    %c0_i32_0 = arith.constant 0 : i32
    %c0_i32_1 = arith.constant 0 : i32
    return %c0_i32, %c0_i32_0 : i32, i32
  }
  func.func @transform_7(%arg0: i32) -> (i32, i32) {
    %c0_i32 = arith.constant 0 : i32
    %c0_i32_0 = arith.constant 0 : i32
    %c0_i32_1 = arith.constant 0 : i32
    return %c0_i32, %c0_i32_0 : i32, i32
  }
  func.func @transform_8(%arg0: i32) -> (i32, i32) {
    %c0_i32 = arith.constant 0 : i32
    %c0_i32_0 = arith.constant 0 : i32
    %c0_i32_1 = arith.constant 0 : i32
    return %c0_i32, %c0_i32_0 : i32, i32
  }
  func.func @transform_9(%arg0: i32) -> (i32, i32, i32) {
    %c0_i32 = arith.constant 0 : i32
    %c0_i32_0 = arith.constant 0 : i32
    %c0_i32_1 = arith.constant 0 : i32
    return %arg0, %c0_i32, %c0_i32_0 : i32, i32, i32
  }
}

</mosaic_0001>

<bundles_post_ra>
// kernel: tpu_custom_call.1
= control target key start
LH: loop header
LB: loop body
LE: loop exit
PB: predicated region body
PF: predicated region fallthrough
CT: control target
= control target key end

     0   :  { %14 = vsyncpa [#allocation3], 0  ;;  %s3224_s0 = inlined_call_operand.vmem [shape: f32[1,4,3,512], index: 0, kind: input, shape index: {}]   ;;  %s3225_s1 = inlined_call_operand.hbm [shape: f32[7,512], index: 1, kind: input, shape index: {}]   ;;  %s3226_s2 = inlined_call_operand.hbm [shape: f32[7,512], index: 2, kind: input, shape index: {}]   ;;  %s3227_s3 = inlined_call_operand.vmem [shape: f32[9,512], index: 3, kind: input, shape index: {}]   ;;  %s3228_s4 = inlined_call_operand.vmem [shape: f32[56,56], index: 4, kind: input, shape index: {}]   ;;  %s3229_s5 = inlined_call_operand.vmem [shape: f32[48,72], index: 5, kind: input, shape index: {}]   ;;  %s3230_s6 = inlined_call_operand.vmem [shape: f32[48,1], index: 6, kind: input, shape index: {}]   ;;  %s3231_s7 = inlined_call_operand.vmem [shape: f32[72,48], index: 7, kind: input, shape index: {}]   ;;  %s3232_s8 = inlined_call_operand.vmem [shape: f32[3,1], index: 8, kind: input, shape index: {}]   ;;  %s3233_s9 = inlined_call_operand.vmem [shape: f32[1,3,512], index: 9, kind: output, shape index: {}]  }
   0x1   :  { %15 = vsyncpa [#allocation5], 0  ;;  %s2218_s30 = smov [#allocation2]   ;;  %s2219_s11 = smov [#allocation4]  }
   0x2   :  { %s24_s10 = sshll.u32 %s2218_s30, 4  ;;  %s34_s12 = sshll.u32 %s2219_s11, 4  ;;  %s25_s10 = int_to_ptr.vmem [resolvable:$true] %s24_s10  ;;  %s35_s12 = int_to_ptr.vmem [resolvable:$true] %s34_s12 }
   0x3   :  { %s2170_s15 = scalar_lea.hbm %s3225_s1, 512 }
   0x4   :  { %p2171_p0 = scmp.ne.s32.totalorder %s3225_s1, %s2170_s15  ;;  %p2174_p1 = scmp.lt.u32.totalorder %s2170_s15, %s3225_s1 }
   0x6   :  { %p2176_p2 = pnand %p2174_p1, %p2171_p0 }
   0x8   :  { %2179 = shalt.err (!%p2176_p2)
}
   0x9   :  { %s2180_s20 = scalar_lea.vmem %s25_s10, 512  ;;  %p2185_p4 = scmp.lt.s32.totalorder %s25_s10, %s25_s10 }
   0xa   :  { %p2181_p3 = scmp.ne.s32.totalorder %s25_s10, %s2180_s20  ;;  %p2186_p5 = scmp.lt.s32.totalorder %s2180_s20, %s2180_s20 }
   0xc   :  { %p2187_p6 = por %p2186_p5, %p2185_p4 }
   0xe   :  { %p2188_p7 = pnand %p2187_p6, %p2181_p3 }
  0x10   :  { %2191 = shalt.err (!%p2188_p7)
}
  0x11   :  { %27 = dma.hbm_to_vmem [thread:$0]  %s3225_s1, 512, %s25_s10, [#allocation3]  }
  0x12   :  { %s2192_s25 = scalar_lea.hbm %s3226_s2, 512 }
  0x13   :  { %p2193_p8 = scmp.ne.s32.totalorder %s3226_s2, %s2192_s25  ;;  %p2196_p9 = scmp.lt.u32.totalorder %s2192_s25, %s3226_s2 }
  0x15   :  { %p2198_p10 = pnand %p2196_p9, %p2193_p8 }
  0x17   :  { %2201 = shalt.err (!%p2198_p10)
}
  0x18   :  { %s2202_s30 = scalar_lea.vmem %s35_s12, 512  ;;  %p2207_p12 = scmp.lt.s32.totalorder %s35_s12, %s35_s12 }
  0x19   :  { %p2203_p11 = scmp.ne.s32.totalorder %s35_s12, %s2202_s30  ;;  %p2208_p13 = scmp.lt.s32.totalorder %s2202_s30, %s2202_s30 }
  0x1b   :  { %p2209_p0 = por %p2208_p13, %p2207_p12 }
  0x1d   :  { %p2210_p1 = pnand %p2209_p0, %p2203_p11 }
  0x1f   :  { %2213 = shalt.err (!%p2210_p1)
}
  0x20   :  { %37 = dma.hbm_to_vmem [thread:$0]  %s3226_s2, 512, %s35_s12, [#allocation5]  }
  0x21   :  { %2214 = dma.done.wait [#allocation3], 512  }
  0x22   :  { %2215 = vsyncadd [#allocation3], 4294966784 }
  0x23   :  { %2216 = dma.done.wait [#allocation5], 512  }
  0x24   :  { %2217 = vsyncadd [#allocation5], 4294966784  ;;  %v57_v0 = vld [vmem:[%s3224_s0 + $0x8] sm:$0x77]  ;;  %v59_v1 = vld [vmem:[%s3224_s0 + $0x18] sm:$0x77]  ;;  %v114_v39 = vlaneseq }
  0x25   :  { %v61_v2 = vld [vmem:[%s3224_s0 + $0x28] sm:$0x77]  ;;  %v65_v3 = vadd.f32 %v59_v1, %v57_v0  ;;  %v67_v4 = vmax.f32 %v57_v0, %v59_v1  ;;  %v56_v5 = vld [vmem:[%s3224_s0] sm:$0x77]  ;;  %v58_v6 = vld [vmem:[%s3224_s0 + $0x10] sm:$0x77] }
  0x26   :  { %v63_v7 = vld [vmem:[%s3224_s0 + $0x38] sm:$0x77]  ;;  %v60_v8 = vld [vmem:[%s3224_s0 + $0x20] sm:$0x77]  ;;  %v64_v9 = vadd.f32 %v58_v6, %v56_v5  ;;  %v66_v10 = vmax.f32 %v56_v5, %v58_v6  ;;  %v62_v13 = vld [vmem:[%s3224_s0 + $0x30] sm:$0x77] }
  0x27   :  { %v69_v11 = vadd.f32 %v65_v3, %v61_v2  ;;  %v71_v12 = vmax.f32 %v67_v4, %v61_v2  ;;  %vm96_vm0 = vcmask 1042432   ;;  %vm101_vm1 = vcmask 1045504   ;;  %s2220_s0 = smov 3   ;;  %s2221_s26 = smov 2  }
  0x28   :  { %v68_v14 = vadd.f32 %v64_v9, %v60_v8  ;;  %v70_v15 = vmax.f32 %v66_v10, %v60_v8  ;;  %s2222_s27 = smov 1   ;;  %s2223_s28 = smov 127   ;;  %v2225_v38 = vmov 0.0   ;;  %v124_v42 = vshrl.u32 %v114_v39, 7 }
  0x29   :  { %v73_v16 = vadd.f32 %v69_v11, %v63_v7  ;;  %v75_v17 = vmax.f32 %v71_v12, %v63_v7  ;;  %s2224_s29 = smov 126   ;;  %440 = vmatprep.mubr.f32.mxu0 %v2225_v38  ;;  %547 = vmatprep.mubr.f32.mxu1 %v2225_v38  ;;  %s2226_s30 = smov 125   ;;  %v2367_v43 = vand.u32 127, %v114_v39  ;;  %v121_v47 = vld [vmem:[#allocation2] ss:$8 sm:$0xf] }
  0x2a   :  { %v72_v18 = vadd.f32 %v68_v14, %v62_v13  ;;  %v74_v19 = vmax.f32 %v70_v15, %v62_v13  ;;  %v2369_v46 = vsub.s32 3, %v124_v42  ;;  %v161_v50 = vld [vmem:[#allocation2 + $0x1] ss:$8 sm:$0xf]  ;;  %v2377_v55 = vsub.s32 0, %v124_v42  ;;  %s2228_s22 = smov 48  }
  0x2b   :  { %v77_v20 = vmul.f32 0.25, %v73_v16  ;;  %v90_v21 = vrot.slane %v75_v17, 5  ;;  %v87_v22 = vcombine.high %v75_v17, %v75_v17  ;;  %vm116_vm2 = vcmp.lt.s32.totalorder %v2367_v43, 3  ;;  %v201_v62 = vld [vmem:[#allocation2 + $0x2] ss:$8 sm:$0xf] }
  0x2c   :  { %v76_v23 = vmul.f32 0.25, %v72_v18  ;;  %v88_v24 = vrot.slane %v74_v19, 5  ;;  %v86_v25 = vcombine.high %v74_v19, %v74_v19  ;;  %v138_v51 = vrot.slane %v121_v47, %v2369_v46  ;;  %s2230_s23 = smov 16   ;;  %s2231_s24 = smov 112  }
  0x2d   :  { %v2338_v26 = vsel %vm96_vm0, %v77_v20, %v90_v21  ;;  %v81_v27 = vcombine.high %v77_v20, %v77_v20  ;;  %v91_v28 = vrot.slane %v87_v22, 5  ;;  %v178_v52 = vrot.slane %v161_v50, %v2369_v46  ;;  %s2232_s25 = smov 96   ;;  %s2237_s1 = smov 111  }
  0x2e   :  { %v104_v29 = vsel %vm101_vm1, %v2338_v26, 0.0  ;;  %v2343_v30 = vsel %vm96_vm0, %v76_v23, %v88_v24  ;;  %v80_v31 = vcombine.high %v76_v23, %v76_v23  ;;  %v89_v32 = vrot.slane %v86_v25, 5 }
  0x2f   :  { %110 = vrot.lane.b32.xlu1 %v104_v29, %s2220_s0  ;;  %v102_v33 = vsel %vm101_vm1, %v2343_v30, 0.0  ;;  %v2348_v34 = vsel %vm96_vm0, %v81_v27, %v91_v28  ;;  %vm155_vm3 = vcmp.lt.s32.totalorder %v2367_v43, 2  ;;  %v2379_v57 = vsub.s32 1, %v124_v42 }
  0x30   :  { %106 = vrot.lane.b32.xlu0 %v102_v33, %s2220_s0  ;;  %v105_v35 = vsel %vm101_vm1, %v2348_v34, 0.0  ;;  %v2353_v36 = vsel %vm96_vm0, %v80_v31, %v89_v32  ;;  %v2381_v58 = vsub.s32 2, %v124_v42  ;;  %v126_v1 = vrot.slane %v121_v47, %v2377_v55 }
  0x31   :  { %v103_v37 = vsel %vm101_vm1, %v2353_v36, 0.0  ;;  %vm195_vm4 = vcmp.lt.s32.totalorder %v2367_v43, 1  ;;  %v170_v3 = vrot.slane %v161_v50, %v2379_v57  ;;  %v166_v5 = vrot.slane %v161_v50, %v2377_v55 }
  0x32   :  { %v174_v4 = vrot.slane %v161_v50, %v2381_v58  ;;  %v218_v8 = vrot.slane %v201_v62, %v2369_v46  ;;  %v210_v10 = vrot.slane %v201_v62, %v2379_v57  ;;  %v214_v11 = vrot.slane %v201_v62, %v2381_v58 }
  0x33   :  { %112 = vrot.lane.b32.xlu1 %v105_v35, %s2220_s0  ;;  %v130_v12 = vrot.slane %v121_v47, %v2379_v57  ;;  %v134_v13 = vrot.slane %v121_v47, %v2381_v58  ;;  %v206_v16 = vrot.slane %v201_v62, %v2377_v55  ;;  %vm2227_vm5 = vmmov 1  }
  0x34   :  { %147 = vrot.lane.b32.xlu0 %v102_v33, %s2221_s26  ;;  %vm2418_vm6 = vmpackc.low %vm101_vm1, %vm2227_vm5  ;;  %vm275_vm7 = vcmp.lt.s32.totalorder %v2367_v43, 126  ;;  %vm235_vm8 = vcmp.lt.s32.totalorder %v2367_v43, 127  ;;  %vm315_vm9 = vcmp.lt.s32.totalorder %v2367_v43, 125  ;;  %vm354_vm10 = vcmask 457728  }
  0x35   :  { %vm637_vm11 = vcmp.lt.s32.totalorder %v2367_v43, 32  ;;  %vm598_vm12 = vcmp.lt.s32.totalorder %v2367_v43, 48  ;;  %vm681_vm13 = vcmp.lt.s32.totalorder %v2367_v43, 16  ;;  %vm729_vm14 = vcmp.lt.s32.totalorder %v2367_v43, 112 }
  0x36   :  { %vm773_vm15 = vcmp.lt.s32.totalorder %v2367_v43, 96  ;;  %vm817_vm1 = vcmp.lt.s32.totalorder %v2367_v43, 80  ;;  %vm1057_vm5 = vcmp.lt.s32.totalorder %v2367_v43, 113 }
  0x37   :  { %149 = vrot.lane.b32.xlu1 %v103_v37, %s2221_s26 }
  0x38   :  { %151 = vrot.lane.b32.xlu0 %v104_v29, %s2221_s26 }
  0x3b   :  { %153 = vrot.lane.b32.xlu1 %v105_v35, %s2221_s26  ;;  %s2234_s26 = smov 17  }
  0x3c   :  { %187 = vrot.lane.b32.xlu0 %v102_v33, %s2222_s27 }
  0x3f   :  { %189 = vrot.lane.b32.xlu1 %v103_v37, %s2222_s27 }
  0x40   :  { %191 = vrot.lane.b32.xlu0 %v104_v29, %s2222_s27 }
  0x43   :  { %193 = vrot.lane.b32.xlu1 %v105_v35, %s2222_s27 }
  0x44   :  { %108 = vrot.lane.b32.xlu0 %v103_v37, %s2220_s0  ;;  %s2233_s0 = smov 80  }
  0x47   :  { %229 = vrot.lane.b32.xlu1 %v103_v37, %s2223_s28 }
  0x48   :  { %227 = vrot.lane.b32.xlu0 %v102_v33, %s2223_s28 }
  0x4b   :  { %233 = vrot.lane.b32.xlu1 %v105_v35, %s2223_s28 }
  0x4c   :  { %231 = vrot.lane.b32.xlu0 %v104_v29, %s2223_s28 }
  0x4f   :  { %269 = vrot.lane.b32.xlu1 %v103_v37, %s2224_s29 }
  0x50   :  { %267 = vrot.lane.b32.xlu0 %v102_v33, %s2224_s29 }
  0x53   :  { %273 = vrot.lane.b32.xlu1 %v105_v35, %s2224_s29 }
  0x54   :  { %271 = vrot.lane.b32.xlu0 %v104_v29, %s2224_s29  ;;  %s2235_s29 = smov 15  }
  0x57   :  { %309 = vrot.lane.b32.xlu1 %v103_v37, %s2226_s30 }
  0x58   :  { %307 = vrot.lane.b32.xlu0 %v102_v33, %s2226_s30 }
  0x5b   :  { %313 = vrot.lane.b32.xlu1 %v105_v35, %s2226_s30 }
  0x5c   :  { %311 = vrot.lane.b32.xlu0 %v104_v29, %s2226_s30  ;;  %s2236_s30 = smov 113  }
  0xa1   :  { %v111_v40 = vpop.permute.xlu1 %110 }
  0xa2   :  { %v107_v41 = vpop.permute.xlu0 %106 }
  0xa5   :  { %v113_v44 = vpop.permute.xlu1 %112 }
  0xa6   :  { %v148_v45 = vpop.permute.xlu0 %147  ;;  %v117_v53 = vsel %vm116_vm2, %v111_v40, %v113_v44  ;;  %v120_v14 = vsel %vm116_vm2, %v113_v44, %v107_v41 }
  0xa7   :  { %v146_v60 = vmul.f32 %v138_v51, %v117_v53  ;;  %v143_v37 = vmul.f32 %v126_v1, %v120_v14 }
  0xa9   :  { %v150_v48 = vpop.permute.xlu1 %149 }
  0xaa   :  { %v152_v49 = vpop.permute.xlu0 %151  ;;  %v158_v9 = vsel %vm155_vm3, %v148_v45, %v150_v48 }
  0xab   :  { %v157_v6 = vsel %vm155_vm3, %v150_v48, %v152_v49  ;;  %v184_v20 = vmul.f32 %v170_v3, %v158_v9 }
  0xac   :  { %v185_v21 = vmul.f32 %v174_v4, %v157_v6 }
  0xad   :  { %v154_v54 = vpop.permute.xlu1 %153 }
  0xae   :  { %v188_v56 = vpop.permute.xlu0 %187  ;;  %v156_v59 = vsel %vm155_vm3, %v152_v49, %v154_v54  ;;  %v159_v7 = vsel %vm155_vm3, %v154_v54, %v148_v45  ;;  %vm939_vm3 = vcmp.lt.s32.totalorder %v2367_v43, 15 }
  0xaf   :  { %v186_v61 = vmul.f32 %v178_v52, %v156_v59  ;;  %v183_v22 = vmul.f32 %v166_v5, %v159_v7  ;;  %v281_v52 = vld [vmem:[#allocation2 + $0x5] ss:$8 sm:$0xf] }
  0xb0   :  { %v286_v59 = vrot.slane %v281_v52, %v2377_v55 }
  0xb1   :  { %v190_v63 = vpop.permute.xlu1 %189  ;;  %v2061_v0 = vpack.c.bf16 %v186_v61, %v146_v60  ;;  %v2049_v47 = vpack.c.bf16 %v183_v22, %v143_v37  ;;  %v298_v60 = vrot.slane %v281_v52, %v2369_v46 }
  0xb2   :  { %v192_v2 = vpop.permute.xlu0 %191  ;;  %v198_v15 = vsel %vm195_vm4, %v188_v56, %v190_v63 }
  0xb3   :  { %2062 = vmatprep.subr.bf16.mxu1 %v2061_v0  ;;  %v197_v23 = vsel %vm195_vm4, %v190_v63, %v192_v2  ;;  %v224_v28 = vmul.f32 %v210_v10, %v198_v15  ;;  %v290_v63 = vrot.slane %v281_v52, %v2379_v57  ;;  %v294_v0 = vrot.slane %v281_v52, %v2381_v58 }
  0xb4   :  { %v225_v39 = vmul.f32 %v214_v11, %v197_v23 }
  0xb5   :  { %v194_v17 = vpop.permute.xlu1 %193  ;;  %v2051_v48 = vpack.c.bf16 %v2353_v36, %v224_v28  ;;  %v241_v36 = vld [vmem:[#allocation2 + $0x4] ss:$8 sm:$0xf] }
  0xb6   :  { %v196_v18 = vsel %vm195_vm4, %v192_v2, %v194_v17  ;;  %v109_v19 = vpop.permute.xlu0 %108  ;;  %v199_v29 = vsel %vm195_vm4, %v194_v17, %v188_v56  ;;  %v2068_v49 = vpack.c.bf16 %v2338_v26, %v225_v39  ;;  %v258_v26 = vrot.slane %v241_v36, %v2369_v46 }
  0xb7   :  { %v226_v24 = vmul.f32 %v218_v8, %v196_v18  ;;  %v118_v25 = vsel %vm116_vm2, %v109_v19, %v111_v40  ;;  %v119_v27 = vsel %vm116_vm2, %v107_v41, %v109_v19  ;;  %v223_v41 = vmul.f32 %v206_v16, %v199_v29 }
  0xb8   :  { %v144_v31 = vmul.f32 %v130_v12, %v119_v27  ;;  %v145_v32 = vmul.f32 %v134_v13, %v118_v25  ;;  %v254_v61 = vrot.slane %v241_v36, %v2381_v58  ;;  %v246_v1 = vrot.slane %v241_v36, %v2377_v55 }
  0xb9   :  { %v2065_v33 = vpack.c.bf16 %v2348_v34, %v226_v24  ;;  %v230_v35 = vpop.permute.xlu1 %229  ;;  %v2054_v51 = vpack.c.bf16 %v2343_v30, %v223_v41  ;;  %v250_v30 = vrot.slane %v241_v36, %v2379_v57  ;;  %v347_v41 = vld [vmem:[%s3228_s4] sm:$0xff]  ;;  %vm861_vm2 = vcmp.lt.s32.totalorder %v2367_v43, 17 }
  0xba   :  { %v228_v42 = vpop.permute.xlu0 %227  ;;  %v2047_v44 = vpack.c.bf16 %v184_v20, %v144_v31  ;;  %v2063_v45 = vpack.c.bf16 %v185_v21, %v145_v32  ;;  %v321_v20 = vld [vmem:[#allocation2 + $0x6] ss:$8 sm:$0xf] }
  0xbb   :  { %v238_v5 = vsel %vm235_vm8, %v228_v42, %v230_v35  ;;  %v338_v25 = vrot.slane %v321_v20, %v2369_v46  ;;  %v330_v27 = vrot.slane %v321_v20, %v2379_v57  ;;  %v334_v28 = vrot.slane %v321_v20, %v2381_v58 }
  0xbc   :  { %2048 = vmatprep.subr.bf16.mxu0 %v2047_v44  ;;  %2064 = vmatpush1.bf16.msra.mxu1 %v2063_v45  ;;  %v263_v17 = vmul.f32 %v246_v1, %v238_v5  ;;  %v326_v29 = vrot.slane %v321_v20, %v2377_v55 }
  0xbd   :  { %2050 = vmatpush1.bf16.msra.mxu0 %v2049_v47  ;;  %2067 = vmatprep.subr.msk.bf16.mxu1 %vm2418_vm6, %v2065_v33  ;;  %v234_v34 = vpop.permute.xlu1 %233  ;;  %v348_v47 = vld [vmem:[%s3228_s4 + $0x8] sm:$0xff] }
  0xbe   :  { %2053 = vmatprep.subr.msk.bf16.mxu0 %vm2418_vm6, %v2051_v48  ;;  %v232_v50 = vpop.permute.xlu0 %231  ;;  %v239_v56 = vsel %vm235_vm8, %v234_v34, %v228_v42  ;;  %v349_v48 = vld [vmem:[%s3228_s4 + $0x10] sm:$0xff] }
  0xbf   :  { %v236_v2 = vsel %vm235_vm8, %v232_v50, %v234_v34  ;;  %v237_v3 = vsel %vm235_vm8, %v230_v35, %v232_v50  ;;  %v266_v6 = vmul.f32 %v258_v26, %v239_v56  ;;  %v350_v34 = vld [vmem:[%s3228_s4 + $0x18] sm:$0xff]  ;;  %v352_v50 = vld [vmem:[%s3228_s4 + $0x28] sm:$0xff] }
  0xc0   :  { %2070 = vmatpush1.bf16.msk.msra.mxu1 %vm2418_vm6, %v2068_v49  ;;  %v264_v13 = vmul.f32 %v250_v30, %v237_v3  ;;  %v265_v14 = vmul.f32 %v254_v61, %v236_v2  ;;  %v351_v49 = vld [vmem:[%s3228_s4 + $0x20] sm:$0xff] }
  0xc1   :  { %2056 = vmatpush1.bf16.msk.msra.mxu0 %vm2418_vm6, %v2054_v51  ;;  %v270_v53 = vpop.permute.xlu1 %269  ;;  %v353_v51 = vld [vmem:[%s3228_s4 + $0x30] sm:$0xff]  ;;  %s2229_s4 = smov 32   ;;  %vm1136_vm6 = vcmp.lt.s32.totalorder %v2367_v43, 111 }
  0xc2   :  { %v268_v54 = vpop.permute.xlu0 %267 }
  0xc3   :  { %v278_v62 = vsel %vm275_vm7, %v268_v54, %v270_v53 }
  0xc4   :  { %v303_v9 = vmul.f32 %v286_v59, %v278_v62 }
  0xc5   :  { %v274_v4 = vpop.permute.xlu1 %273 }
  0xc6   :  { %v279_v7 = vsel %vm275_vm7, %v274_v4, %v268_v54  ;;  %v272_v8 = vpop.permute.xlu0 %271  ;;  %v2059_v24 = vpack.c.bf16 %v303_v9, %v263_v17 }
  0xc7   :  { %v306_v10 = vmul.f32 %v298_v60, %v279_v7  ;;  %v276_v11 = vsel %vm275_vm7, %v272_v8, %v274_v4  ;;  %v277_v12 = vsel %vm275_vm7, %v270_v53, %v272_v8  ;;  %vm1210_vm7 = vcmask 588800  }
  0xc8   :  { %v304_v15 = vmul.f32 %v290_v63, %v277_v12  ;;  %v305_v16 = vmul.f32 %v294_v0, %v276_v11 }
  0xc9   :  { %v310_v18 = vpop.permute.xlu1 %309  ;;  %v2071_v19 = vpack.c.bf16 %v306_v10, %v266_v6 }
  0xca   :  { %v308_v21 = vpop.permute.xlu0 %307  ;;  %v2057_v22 = vpack.c.bf16 %v304_v15, %v264_v13  ;;  %v2073_v23 = vpack.c.bf16 %v305_v16, %v265_v14 }
  0xcb   :  { %2072 = vmatprep.subr.bf16.mxu1 %v2071_v19  ;;  %v318_v32 = vsel %vm315_vm9, %v308_v21, %v310_v18 }
  0xcc   :  { %2058 = vmatprep.subr.bf16.mxu0 %v2057_v22  ;;  %2074 = vmatpush1.bf16.msra.mxu1 %v2073_v23  ;;  %v343_v40 = vmul.f32 %v326_v29, %v318_v32 }
  0xcd   :  { %2060 = vmatpush1.bf16.msra.mxu0 %v2059_v24  ;;  %v314_v31 = vpop.permute.xlu1 %313 }
  0xce   :  { %v319_v33 = vsel %vm315_vm9, %v314_v31, %v308_v21  ;;  %v312_v35 = vpop.permute.xlu0 %311 }
  0xcf   :  { %v346_v37 = vmul.f32 %v338_v25, %v319_v33  ;;  %v316_v39 = vsel %vm315_vm9, %v312_v35, %v314_v31  ;;  %v317_v42 = vsel %vm315_vm9, %v310_v18, %v312_v35  ;;  %v643_v31 = vld [vmem:[#allocation4 + $0x1] ss:$8 sm:$0xf]  ;;  %vm1464_vm9 = vcmask 392192  }
  0xd0   :  { %v344_v44 = vmul.f32 %v330_v27, %v317_v42  ;;  %v345_v45 = vmul.f32 %v334_v28, %v316_v39  ;;  %v2537_v28 = vld [vmem:[#allocation4] ss:$8 sm:$0xf]  ;;  %v648_v32 = vrot.slane %v643_v31, %v2377_v55  ;;  %v687_v39 = vld [vmem:[#allocation4 + $0x2] ss:$8 sm:$0xf] }
  0xd1   :  { %495 = vmatprep.subr.mxu1 %v346_v37  ;;  %v612_v33 = vrot.slane %v2537_v28, %v2379_v57  ;;  %v616_v35 = vrot.slane %v2537_v28, %v2381_v58 }
  0xd2   :  { %388 = vmatprep.subr.mxu0 %v344_v44  ;;  %496 = vmatpush1.msra.mxu1 %v345_v45  ;;  %v608_v44 = vrot.slane %v2537_v28, %v2377_v55  ;;  %v620_v45 = vrot.slane %v2537_v28, %v2369_v46 }
  0xd3   :  { %389 = vmatpush1.msra.mxu0 %v343_v40  ;;  %2003 = vmatmul.mubr.msk.f32.vlgmr.msra.gmra.mrb[0].mxu1 %vm354_vm10, %v347_v41  ;;  %v692_v40 = vrot.slane %v687_v39, %v2377_v55 }
  0xd4   :  { %1994 = vmatmul.mubr.msk.f32.vlgmr.msra.gmra.mrb[0].mxu0 %vm354_vm10, %v347_v41  ;;  %553 = vmatprep.mubr.f32.mxu1 %v2225_v38  ;;  %v2556_v41 = vld [vmem:[#allocation4 + $0x4] ss:$8 sm:$0xf] }
  0xd5   :  { %446 = vmatprep.mubr.f32.mxu0 %v2225_v38 }
  0xd7   :  { %2004 = vmatmul.mubr.msk.f32.gmra.mrb[2].mxu1 %vm354_vm10, %v348_v47 }
  0xd8   :  { %1995 = vmatmul.mubr.msk.f32.gmra.mrb[2].mxu0 %vm354_vm10, %v348_v47  ;;  %559 = vmatprep.mubr.f32.mxu1 %v2225_v38 }
  0xd9   :  { %452 = vmatprep.mubr.f32.mxu0 %v2225_v38 }
  0xdb   :  { %2005 = vmatmul.mubr.msk.f32.gmra.mrb[4].mxu1 %vm354_vm10, %v349_v48 }
  0xdc   :  { %1996 = vmatmul.mubr.msk.f32.gmra.mrb[4].mxu0 %vm354_vm10, %v349_v48  ;;  %565 = vmatprep.mubr.f32.mxu1 %v2225_v38 }
  0xdd   :  { %458 = vmatprep.mubr.f32.mxu0 %v2225_v38 }
  0xdf   :  { %2006 = vmatmul.mubr.msk.f32.gmra.mrb[6].mxu1 %vm354_vm10, %v350_v34 }
  0xe0   :  { %1997 = vmatmul.mubr.msk.f32.gmra.mrb[6].mxu0 %vm354_vm10, %v350_v34  ;;  %571 = vmatprep.mubr.f32.mxu1 %v2225_v38  ;;  %v652_v34 = vrot.slane %v643_v31, %v2379_v57 }
  0xe1   :  { %464 = vmatprep.mubr.f32.mxu0 %v2225_v38 }
  0xe3   :  { %2007 = vmatmul.mubr.msk.f32.gmra.mrb[8].mxu1 %vm354_vm10, %v351_v49 }
  0xe4   :  { %1998 = vmatmul.mubr.msk.f32.gmra.mrb[8].mxu0 %vm354_vm10, %v351_v49  ;;  %577 = vmatprep.mubr.f32.mxu1 %v2225_v38  ;;  %v656_v49 = vrot.slane %v643_v31, %v2381_v58 }
  0xe5   :  { %470 = vmatprep.mubr.f32.mxu0 %v2225_v38 }
  0xe7   :  { %2008 = vmatmul.mubr.msk.f32.gmra.mrb[10].mxu1 %vm354_vm10, %v352_v50 }
  0xe8   :  { %1999 = vmatmul.mubr.msk.f32.gmra.mrb[10].mxu0 %vm354_vm10, %v352_v50  ;;  %583 = vmatprep.mubr.f32.mxu1 %v2225_v38 }
  0xe9   :  { %476 = vmatprep.mubr.f32.mxu0 %v2225_v38 }
  0xeb   :  { %2009 = vmatmul.mubr.msk.f32.gmra.mrb[12].mxu1 %vm354_vm10, %v353_v51 }
  0xec   :  { %2000 = vmatmul.mubr.msk.f32.gmra.mrb[12].mxu0 %vm354_vm10, %v353_v51  ;;  %1394 = vmatprep.mubr.f32.mxu1 %v2225_v38  ;;  %v660_v51 = vrot.slane %v643_v31, %v2369_v46 }
  0xed   :  { %1293 = vmatprep.mubr.f32.mxu0 %v2225_v38 }
 0x1a6   :  { %v549_v52 = vpop.f32.mrb[0].mxu1 }
 0x1a7   :  { %v442_v36 = vpop.f32.mrb[0].mxu0  ;;  %v551_v53 = vpop.f32.mrb[1].mxu1 }
 0x1a8   :  { %590 = vrot.lane.b32.xlu0 %v442_v36, %s2228_s22  ;;  %v444_v26 = vpop.f32.mrb[1].mxu0  ;;  %v696_v36 = vrot.slane %v687_v39, %v2379_v57 }
 0x1a9   :  { %592 = vrot.lane.b32.xlu1 %v444_v26, %s2228_s22  ;;  %v2567_v26 = vld [vmem:[#allocation4 + $0x5] ss:$8 sm:$0xf] }
 0x1aa   :  { %v555_v54 = vpop.f32.mrb[2].mxu1 }
 0x1ab   :  { %v448_v56 = vpop.f32.mrb[2].mxu0  ;;  %v557_v30 = vpop.f32.mrb[3].mxu1 }
 0x1ac   :  { %594 = vrot.lane.b32.xlu0 %v549_v52, %s2228_s22  ;;  %v450_v59 = vpop.f32.mrb[3].mxu0 }
 0x1ad   :  { %596 = vrot.lane.b32.xlu1 %v551_v53, %s2228_s22  ;;  %v700_v53 = vrot.slane %v687_v39, %v2381_v58 }
 0x1ae   :  { %v561_v60 = vpop.f32.mrb[4].mxu1 }
 0x1af   :  { %v454_v61 = vpop.f32.mrb[4].mxu0  ;;  %v563_v62 = vpop.f32.mrb[5].mxu1 }
 0x1b0   :  { %629 = vrot.lane.b32.xlu0 %v448_v56, %s2229_s4  ;;  %v456_v63 = vpop.f32.mrb[5].mxu0  ;;  %v740_v56 = vrot.slane %v2556_v41, %v2377_v55 }
 0x1b1   :  { %631 = vrot.lane.b32.xlu1 %v450_v59, %s2229_s4 }
 0x1b2   :  { %v2521_v0 = vpop.f32.mrb[6].mxu1 }
 0x1b3   :  { %v2523_v1 = vpop.f32.mrb[6].mxu0  ;;  %v2525_v2 = vpop.f32.mrb[7].mxu1 }
 0x1b4   :  { %633 = vrot.lane.b32.xlu0 %v555_v54, %s2229_s4  ;;  %v2527_v3 = vpop.f32.mrb[7].mxu0  ;;  %v704_v54 = vrot.slane %v687_v39, %v2369_v46  ;;  %v792_v39 = vrot.slane %v2567_v26, %v2381_v58 }
 0x1b5   :  { %635 = vrot.lane.b32.xlu1 %v557_v30, %s2229_s4  ;;  %v744_v30 = vrot.slane %v2556_v41, %v2379_v57 }
 0x1b6   :  { %v573_v4 = vpop.f32.mrb[8].mxu1 }
 0x1b7   :  { %v466_v5 = vpop.f32.mrb[8].mxu0  ;;  %v575_v6 = vpop.f32.mrb[9].mxu1 }
 0x1b8   :  { %673 = vrot.lane.b32.xlu0 %v454_v61, %s2230_s23  ;;  %v468_v7 = vpop.f32.mrb[9].mxu0 }
 0x1b9   :  { %675 = vrot.lane.b32.xlu1 %v456_v63, %s2230_s23  ;;  %v748_v63 = vrot.slane %v2556_v41, %v2381_v58 }
 0x1ba   :  { %v579_v8 = vpop.f32.mrb[10].mxu1 }
 0x1bb   :  { %v472_v9 = vpop.f32.mrb[10].mxu0  ;;  %v581_v10 = vpop.f32.mrb[11].mxu1 }
 0x1bc   :  { %677 = vrot.lane.b32.xlu0 %v561_v60, %s2230_s23  ;;  %v474_v11 = vpop.f32.mrb[11].mxu0 }
 0x1bd   :  { %679 = vrot.lane.b32.xlu1 %v563_v62, %s2230_s23 }
 0x1be   :  { %v585_v12 = vpop.f32.mrb[12].mxu1 }
 0x1bf   :  { %v478_v13 = vpop.f32.mrb[12].mxu0  ;;  %v587_v14 = vpop.f32.mrb[13].mxu1 }
 0x1c0   :  { %721 = vrot.lane.b32.xlu0 %v466_v5, %s2231_s24  ;;  %v480_v15 = vpop.f32.mrb[13].mxu0 }
 0x1c1   :  { %723 = vrot.lane.b32.xlu1 %v468_v7, %s2231_s24  ;;  %v784_v7 = vrot.slane %v2567_v26, %v2377_v55 }
 0x1c4   :  { %725 = vrot.lane.b32.xlu0 %v573_v4, %s2231_s24 }
 0x1c5   :  { %727 = vrot.lane.b32.xlu1 %v575_v6, %s2231_s24  ;;  %v752_v6 = vrot.slane %v2556_v41, %v2369_v46 }
 0x1c8   :  { %765 = vrot.lane.b32.xlu0 %v472_v9, %s2232_s25 }
 0x1c9   :  { %767 = vrot.lane.b32.xlu1 %v474_v11, %s2232_s25 }
 0x1cc   :  { %769 = vrot.lane.b32.xlu0 %v579_v8, %s2232_s25 }
 0x1cd   :  { %771 = vrot.lane.b32.xlu1 %v581_v10, %s2232_s25 }
 0x1d0   :  { %809 = vrot.lane.b32.xlu0 %v478_v13, %s2233_s0 }
 0x1d1   :  { %811 = vrot.lane.b32.xlu1 %v480_v15, %s2233_s0 }
 0x1d4   :  { %813 = vrot.lane.b32.xlu0 %v585_v12, %s2233_s0 }
 0x1d5   :  { %815 = vrot.lane.b32.xlu1 %v587_v14, %s2233_s0 }
 0x21a   :  { %v591_v16 = vpop.permute.xlu0 %590 }
 0x21b   :  { %v593_v17 = vpop.permute.xlu1 %592 }
 0x21c   :  { %v601_v8 = vsel %vm598_vm12, %v591_v16, %v593_v17 }
 0x21d   :  { %v626_v28 = vmul.f32 %v612_v33, %v601_v8 }
 0x21e   :  { %v595_v18 = vpop.permute.xlu0 %594 }
 0x21f   :  { %v597_v19 = vpop.permute.xlu1 %596  ;;  %v600_v12 = vsel %vm598_vm12, %v593_v17, %v595_v18 }
 0x220   :  { %v602_v48 = vsel %vm598_vm12, %v597_v19, %v591_v16  ;;  %v599_v16 = vsel %vm598_vm12, %v595_v18, %v597_v19  ;;  %v796_v18 = vrot.slane %v2567_v26, %v2369_v46 }
 0x221   :  { %v625_v60 = vmul.f32 %v608_v44, %v602_v48  ;;  %v628_v19 = vmul.f32 %v620_v45, %v599_v16 }
 0x222   :  { %v630_v20 = vpop.permute.xlu0 %629 }
 0x223   :  { %v632_v21 = vpop.permute.xlu1 %631 }
 0x224   :  { %v640_v61 = vsel %vm637_vm11, %v630_v20, %v632_v21 }
 0x225   :  { %v666_v13 = vmul.f32 %v652_v34, %v640_v61 }
 0x226   :  { %v634_v22 = vpop.permute.xlu0 %633 }
 0x227   :  { %v636_v23 = vpop.permute.xlu1 %635  ;;  %v639_v5 = vsel %vm637_vm11, %v632_v21, %v634_v22  ;;  %v670_v44 = vadd.f32 %v666_v13, %v626_v28 }
 0x228   :  { %v641_v37 = vsel %vm637_vm11, %v636_v23, %v630_v20  ;;  %v638_v9 = vsel %vm637_vm11, %v634_v22, %v636_v23  ;;  %v788_v20 = vrot.slane %v2567_v26, %v2379_v57  ;;  %v667_v21 = vmul.f32 %v656_v49, %v639_v5 }
 0x229   :  { %v665_v52 = vmul.f32 %v648_v32, %v641_v37  ;;  %v668_v31 = vmul.f32 %v660_v51, %v638_v9  ;;  %v627_v32 = vmul.f32 %v616_v35, %v600_v12 }
 0x22a   :  { %v674_v24 = vpop.permute.xlu0 %673 }
 0x22b   :  { %v676_v25 = vpop.permute.xlu1 %675  ;;  %v669_v10 = vadd.f32 %v665_v52, %v625_v60  ;;  %v671_v48 = vadd.f32 %v667_v21, %v627_v32  ;;  %v672_v51 = vadd.f32 %v668_v31, %v628_v19  ;;  %v1175_v19 = vld [vmem:[%s3230_s6 + $0x8] sm:$0xff] }
 0x22c   :  { %v684_v11 = vsel %vm681_vm13, %v674_v24, %v676_v25 }
 0x22d   :  { %v710_v17 = vmul.f32 %v696_v36, %v684_v11 }
 0x22e   :  { %v678_v27 = vpop.permute.xlu0 %677 }
 0x22f   :  { %v680_v29 = vpop.permute.xlu1 %679  ;;  %v683_v14 = vsel %vm681_vm13, %v676_v25, %v678_v27  ;;  %v714_v52 = vadd.f32 %v710_v17, %v670_v44  ;;  %v1174_v44 = vld [vmem:[%s3230_s6] sm:$0xff] }
 0x230   :  { %v685_v50 = vsel %vm681_vm13, %v680_v29, %v674_v24  ;;  %v682_v22 = vsel %vm681_vm13, %v678_v27, %v680_v29  ;;  %v711_v37 = vmul.f32 %v700_v53, %v683_v14 }
 0x231   :  { %v709_v62 = vmul.f32 %v692_v40, %v685_v50  ;;  %v712_v27 = vmul.f32 %v704_v54, %v682_v22  ;;  %v823_v40 = vld [vmem:[#allocation4 + $0x6] ss:$8 sm:$0xf]  ;;  %v718_v9 = vadd.f32 %v714_v52, %v2527_v3  ;;  %v2010_v52 = vld [vmem:[%s3227_s3 + $0x1] ss:$8 sm:$0xf] }
 0x232   :  { %v2548_v42 = vpop.permute.xlu0 %721  ;;  %v715_v36 = vadd.f32 %v711_v37, %v671_v48  ;;  %v828_v54 = vrot.slane %v823_v40, %v2377_v55  ;;  %v832_v61 = vrot.slane %v823_v40, %v2379_v57  ;;  %v836_v8 = vrot.slane %v823_v40, %v2381_v58  ;;  %v1179_v48 = vld [vmem:[%s3230_s6 + $0x28] sm:$0xff] }
 0x233   :  { %v724_v47 = vpop.permute.xlu1 %723  ;;  %v713_v23 = vadd.f32 %v709_v62, %v669_v10 }
 0x234   :  { %v732_v25 = vsel %vm729_vm14, %v2548_v42, %v724_v47  ;;  %v719_v12 = vadd.f32 %v715_v36, %v2521_v0 }
 0x235   :  { %v717_v34 = vadd.f32 %v713_v23, %v2523_v1  ;;  %v757_v49 = vmul.f32 %v740_v56, %v732_v25  ;;  %v716_v1 = vadd.f32 %v712_v27, %v672_v51  ;;  %v2238_v27 = vmov 0   ;;  %v866_v51 = vld [vmem:[%s3227_s3] ss:$8 sm:$0xf] }
 0x236   :  { %v726_v59 = vpop.permute.xlu0 %725  ;;  %2153 = vset.pattern.permute.xlu1 %v2238_v27  ;;  %2152 = vset.pattern.permute.xlu0 %v2238_v27 }
 0x237   :  { %v728_v4 = vpop.permute.xlu1 %727  ;;  %v731_v35 = vsel %vm729_vm14, %v724_v47, %v726_v59  ;;  %v761_v62 = vadd.f32 %v757_v49, %v717_v34  ;;  %v1890_v34 = vld [vmem:[%s3232_s8] sm:$0x7] }
 0x238   :  { %v730_v45 = vsel %vm729_vm14, %v726_v59, %v728_v4  ;;  %v758_v56 = vmul.f32 %v744_v30, %v731_v35  ;;  %v733_v59 = vsel %vm729_vm14, %v728_v4, %v2548_v42  ;;  %v720_v42 = vadd.f32 %v716_v1, %v2525_v2 }
 0x239   :  { %v759_v5 = vmul.f32 %v748_v63, %v730_v45  ;;  %v760_v63 = vmul.f32 %v752_v6, %v733_v59  ;;  %v840_v4 = vrot.slane %v823_v40, %v2369_v46  ;;  %v1178_v40 = vld [vmem:[%s3230_s6 + $0x20] sm:$0xff]  ;;  %v2753_v1 = vrot.slane %v866_v51, %v2377_v55 }
 0x23a   :  { %v766_v15 = vpop.permute.xlu0 %765  ;;  %v762_v21 = vadd.f32 %v758_v56, %v718_v9  ;;  %v2764_v59 = vrot.slane %v2010_v52, %v2377_v55  ;;  %v2771_v9 = vrot.slane %v2010_v52, %v2369_v46 }
 0x23b   :  { %v768_v24 = vpop.permute.xlu1 %767  ;;  %v764_v17 = vadd.f32 %v760_v63, %v720_v42 }
 0x23c   :  { %v776_v29 = vsel %vm773_vm15, %v766_v15, %v768_v24 }
 0x23d   :  { %v801_v53 = vmul.f32 %v784_v7, %v776_v29  ;;  %v1176_v29 = vld [vmem:[%s3230_s6 + $0x10] sm:$0xff] }
 0x23e   :  { %v770_v33 = vpop.permute.xlu0 %769 }
 0x23f   :  { %v772_v50 = vpop.permute.xlu1 %771  ;;  %v775_v26 = vsel %vm773_vm15, %v768_v24, %v770_v33  ;;  %v805_v13 = vadd.f32 %v801_v53, %v761_v62  ;;  %v2745_v53 = vrot.slane %v866_v51, %v2379_v57 }
 0x240   :  { %v774_v47 = vsel %vm773_vm15, %v770_v33, %v772_v50  ;;  %v802_v10 = vmul.f32 %v788_v20, %v775_v26  ;;  %v777_v30 = vsel %vm773_vm15, %v772_v50, %v766_v15  ;;  %v763_v20 = vadd.f32 %v759_v5, %v719_v12  ;;  %v1177_v33 = vld [vmem:[%s3230_s6 + $0x18] sm:$0xff] }
 0x241   :  { %v803_v14 = vmul.f32 %v792_v39, %v774_v47  ;;  %v804_v15 = vmul.f32 %v796_v18, %v777_v30  ;;  %v2748_v26 = vrot.slane %v2010_v52, %v2379_v57  ;;  %v2756_v47 = vrot.slane %v866_v51, %v2369_v46 }
 0x242   :  { %v810_v60 = vpop.permute.xlu0 %809  ;;  %v806_v24 = vadd.f32 %v802_v10, %v762_v21  ;;  %v2774_v10 = vrot.slane %v866_v51, %v2381_v58 }
 0x243   :  { %v812_v7 = vpop.permute.xlu1 %811  ;;  %v807_v6 = vadd.f32 %v803_v14, %v763_v20  ;;  %v808_v39 = vadd.f32 %v804_v15, %v764_v17 }
 0x244   :  { %v820_v11 = vsel %vm817_vm1, %v810_v60, %v812_v7 }
 0x245   :  { %v845_v16 = vmul.f32 %v828_v54, %v820_v11 }
 0x246   :  { %v814_v3 = vpop.permute.xlu0 %813 }
 0x247   :  { %v2638_v22 = vadd.f32 %v845_v16, %v805_v13  ;;  %v819_v0 = vsel %vm817_vm1, %v812_v7, %v814_v3  ;;  %v816_v23 = vpop.permute.xlu1 %815 }
 0x248   :  { %v846_v28 = vmul.f32 %v832_v61, %v819_v0  ;;  %v818_v2 = vsel %vm817_vm1, %v814_v3, %v816_v23  ;;  %v821_v41 = vsel %vm817_vm1, %v816_v23, %v810_v60  ;;  %v2761_v61 = vrot.slane %v2010_v52, %v2381_v58 }
 0x249   :  { %v847_v31 = vmul.f32 %v836_v8, %v818_v2  ;;  %853 = vrot.lane.b32.xlu0 %v2638_v22, %s2234_s26  ;;  %v848_v32 = vmul.f32 %v840_v4, %v821_v41 }
 0x24a   :  { %v2648_v25 = vadd.f32 %v846_v28, %v806_v24 }
 0x24b   :  { %v2650_v37 = vadd.f32 %v847_v31, %v807_v6  ;;  %v2656_v18 = vadd.f32 %v848_v32, %v808_v39  ;;  %v2011_v6 = vld [vmem:[%s3227_s3 + $0x2] ss:$8 sm:$0xf]  ;;  %v2012_v31 = vld [vmem:[%s3227_s3 + $0x3] ss:$8 sm:$0xf] }
 0x24c   :  { %855 = vrot.lane.b32.xlu1 %v2648_v25, %s2234_s26  ;;  %v2800_v39 = vrot.slane %v2011_v6, %v2379_v57  ;;  %v2808_v27 = vrot.slane %v2011_v6, %v2377_v55  ;;  %v2826_v52 = vrot.slane %v2012_v31, %v2369_v46 }
 0x24d   :  { %857 = vrot.lane.b32.xlu0 %v2650_v37, %s2234_s26 }
 0x250   :  { %859 = vrot.lane.b32.xlu1 %v2656_v18, %s2234_s26 }
 0x251   :  { %892 = vrot.lane.b32.xlu0 %v2638_v22, %s2230_s23 }
 0x254   :  { %894 = vrot.lane.b32.xlu1 %v2648_v25, %s2230_s23 }
 0x255   :  { %896 = vrot.lane.b32.xlu0 %v2650_v37, %s2230_s23 }
 0x258   :  { %898 = vrot.lane.b32.xlu1 %v2656_v18, %s2230_s23 }
 0x259   :  { %931 = vrot.lane.b32.xlu0 %v2638_v22, %s2235_s29 }
 0x25c   :  { %933 = vrot.lane.b32.xlu1 %v2648_v25, %s2235_s29 }
 0x25d   :  { %935 = vrot.lane.b32.xlu0 %v2650_v37, %s2235_s29 }
 0x260   :  { %937 = vrot.lane.b32.xlu1 %v2656_v18, %s2235_s29 }
 0x261   :  { %971 = vrot.lane.b32.xlu0 %v2638_v22, %s2222_s27 }
 0x264   :  { %973 = vrot.lane.b32.xlu1 %v2648_v25, %s2222_s27 }
 0x265   :  { %975 = vrot.lane.b32.xlu0 %v2650_v37, %s2222_s27 }
 0x268   :  { %977 = vrot.lane.b32.xlu1 %v2656_v18, %s2222_s27 }
 0x269   :  { %1010 = vrot.lane.b32.xlu0 %v2638_v22, %s2223_s28 }
 0x26c   :  { %1012 = vrot.lane.b32.xlu1 %v2648_v25, %s2223_s28 }
 0x26d   :  { %1014 = vrot.lane.b32.xlu0 %v2650_v37, %s2223_s28 }
 0x270   :  { %1016 = vrot.lane.b32.xlu1 %v2656_v18, %s2223_s28 }
 0x271   :  { %1049 = vrot.lane.b32.xlu0 %v2638_v22, %s2236_s30 }
 0x274   :  { %1051 = vrot.lane.b32.xlu1 %v2648_v25, %s2236_s30 }
 0x275   :  { %1053 = vrot.lane.b32.xlu0 %v2650_v37, %s2236_s30 }
 0x278   :  { %1055 = vrot.lane.b32.xlu1 %v2656_v18, %s2236_s30 }
 0x279   :  { %1089 = vrot.lane.b32.xlu0 %v2638_v22, %s2231_s24 }
 0x27c   :  { %1091 = vrot.lane.b32.xlu1 %v2648_v25, %s2231_s24 }
 0x27d   :  { %1093 = vrot.lane.b32.xlu0 %v2650_v37, %s2231_s24 }
 0x280   :  { %1095 = vrot.lane.b32.xlu1 %v2656_v18, %s2231_s24 }
 0x281   :  { %1128 = vrot.lane.b32.xlu0 %v2638_v22, %s2237_s1 }
 0x284   :  { %1130 = vrot.lane.b32.xlu1 %v2648_v25, %s2237_s1 }
 0x285   :  { %1132 = vrot.lane.b32.xlu0 %v2650_v37, %s2237_s1 }
 0x288   :  { %1134 = vrot.lane.b32.xlu1 %v2656_v18, %s2237_s1 }
 0x289   :  { %1182 = vperm.xlu0 %2152, %v1174_v44  }
 0x28c   :  { %1187 = vperm.xlu1 %2153, %v1175_v19   ;;  %v2803_v19 = vrot.slane %v2012_v31, %v2379_v57 }
 0x28d   :  { %1197 = vperm.xlu0 %2152, %v1177_v33   ;;  %v2811_v33 = vrot.slane %v2011_v6, %v2369_v46 }
 0x290   :  { %1192 = vperm.xlu1 %2153, %v1176_v29  }
 0x291   :  { %1207 = vperm.xlu0 %2152, %v1179_v48   ;;  %v2816_v48 = vrot.slane %v2012_v31, %v2381_v58 }
 0x294   :  { %1202 = vperm.xlu1 %2153, %v1178_v40  }
 0x298   :  { %1893 = vperm.xlu1 %2153, %v1890_v34  }
 0x2bb   :  { %v854_v49 = vpop.permute.xlu0 %853 }
 0x2be   :  { %v856_v35 = vpop.permute.xlu1 %855 }
 0x2bf   :  { %v858_v50 = vpop.permute.xlu0 %857  ;;  %v864_v54 = vsel %vm861_vm2, %v854_v49, %v856_v35 }
 0x2c0   :  { %v889_v5 = vmul.f32 %v2745_v53, %v864_v54  ;;  %v863_v12 = vsel %vm861_vm2, %v856_v35, %v858_v50 }
 0x2c1   :  { %v890_v0 = vmul.f32 %v2774_v10, %v863_v12 }
 0x2c2   :  { %v860_v45 = vpop.permute.xlu1 %859 }
 0x2c3   :  { %v893_v36 = vpop.permute.xlu0 %892  ;;  %v862_v30 = vsel %vm861_vm2, %v858_v50, %v860_v45  ;;  %v865_v11 = vsel %vm861_vm2, %v860_v45, %v854_v49  ;;  %v2819_v49 = vrot.slane %v2012_v31, %v2377_v55  ;;  %v2013_v45 = vld [vmem:[%s3227_s3 + $0x5] ss:$8 sm:$0xf] }
 0x2c4   :  { %v888_v3 = vmul.f32 %v2753_v1, %v865_v11  ;;  %v891_v4 = vmul.f32 %v2756_v47, %v862_v30  ;;  %v2846_v12 = vrot.slane %v2013_v45, %v2377_v55 }
 0x2c6   :  { %v895_v56 = vpop.permute.xlu1 %894 }
 0x2c7   :  { %v902_v60 = vsel %vm681_vm13, %v893_v36, %v895_v56  ;;  %v897_v62 = vpop.permute.xlu0 %896 }
 0x2c8   :  { %v928_v7 = vmul.f32 %v2748_v26, %v902_v60  ;;  %v901_v8 = vsel %vm681_vm13, %v895_v56, %v897_v62 }
 0x2c9   :  { %v929_v16 = vmul.f32 %v2761_v61, %v901_v8 }
 0x2ca   :  { %v899_v13 = vpop.permute.xlu1 %898  ;;  %v2075_v14 = vpack.c.bf16 %v928_v7, %v889_v5 }
 0x2cb   :  { %v900_v21 = vsel %vm681_vm13, %v897_v62, %v899_v13  ;;  %v903_v42 = vsel %vm681_vm13, %v899_v13, %v893_v36  ;;  %v932_v63 = vpop.permute.xlu0 %931  ;;  %v2093_v2 = vpack.c.bf16 %v929_v16, %v890_v0  ;;  %v2832_v36 = vrot.slane %v2011_v6, %v2381_v58 }
 0x2cc   :  { %v927_v20 = vmul.f32 %v2764_v59, %v903_v42  ;;  %v930_v15 = vmul.f32 %v2771_v9, %v900_v21  ;;  %2076 = vmatprep.subr.bf16.mxu0 %v2075_v14 }
 0x2ce   :  { %v2077_v23 = vpack.c.bf16 %v927_v20, %v888_v3  ;;  %v934_v24 = vpop.permute.xlu1 %933  ;;  %v2091_v28 = vpack.c.bf16 %v930_v15, %v891_v4 }
 0x2cf   :  { %v936_v41 = vpop.permute.xlu0 %935  ;;  %v942_v44 = vsel %vm939_vm3, %v932_v63, %v934_v24 }
 0x2d0   :  { %2078 = vmatpush1.bf16.msra.mxu0 %v2077_v23  ;;  %2092 = vmatprep.subr.bf16.mxu1 %v2091_v28  ;;  %v968_v35 = vmul.f32 %v2800_v39, %v942_v44  ;;  %v941_v60 = vsel %vm939_vm3, %v934_v24, %v936_v41  ;;  %v2859_v24 = vrot.slane %v2013_v45, %v2381_v58 }
 0x2d1   :  { %2094 = vmatpush1.bf16.msra.mxu1 %v2093_v2  ;;  %v969_v42 = vmul.f32 %v2832_v36, %v941_v60 }
 0x2d2   :  { %v938_v17 = vpop.permute.xlu1 %937 }
 0x2d3   :  { %v972_v32 = vpop.permute.xlu0 %971  ;;  %v940_v54 = vsel %vm939_vm3, %v936_v41, %v938_v17  ;;  %v943_v56 = vsel %vm939_vm3, %v938_v17, %v932_v63  ;;  %v2854_v63 = vrot.slane %v2013_v45, %v2379_v57  ;;  %v2865_v41 = vrot.slane %v2013_v45, %v2369_v46 }
 0x2d4   :  { %v967_v13 = vmul.f32 %v2808_v27, %v943_v56  ;;  %v970_v14 = vmul.f32 %v2811_v33, %v940_v54 }
 0x2d6   :  { %v974_v29 = vpop.permute.xlu1 %973 }
 0x2d7   :  { %v981_v40 = vsel %vm195_vm4, %v972_v32, %v974_v29  ;;  %v976_v34 = vpop.permute.xlu0 %975 }
 0x2d8   :  { %v1007_v50 = vmul.f32 %v2803_v19, %v981_v40  ;;  %v980_v51 = vsel %vm195_vm4, %v974_v29, %v976_v34 }
 0x2d9   :  { %v1008_v7 = vmul.f32 %v2816_v48, %v980_v51 }
 0x2da   :  { %v978_v62 = vpop.permute.xlu1 %977  ;;  %v2079_v5 = vpack.c.bf16 %v1007_v50, %v968_v35 }
 0x2db   :  { %v979_v8 = vsel %vm195_vm4, %v976_v34, %v978_v62  ;;  %v982_v30 = vsel %vm195_vm4, %v978_v62, %v972_v32  ;;  %v1011_v11 = vpop.permute.xlu0 %1010  ;;  %v2097_v15 = vpack.c.bf16 %v1008_v7, %v969_v42 }
 0x2dc   :  { %v1006_v16 = vmul.f32 %v2819_v49, %v982_v30  ;;  %v1009_v21 = vmul.f32 %v2826_v52, %v979_v8  ;;  %2080 = vmatprep.subr.bf16.mxu0 %v2079_v5 }
 0x2de   :  { %v2081_v3 = vpack.c.bf16 %v1006_v16, %v967_v13  ;;  %v1013_v4 = vpop.permute.xlu1 %1012  ;;  %v2095_v20 = vpack.c.bf16 %v1009_v21, %v970_v14 }
 0x2df   :  { %v1020_v0 = vsel %vm235_vm8, %v1011_v11, %v1013_v4  ;;  %v1015_v23 = vpop.permute.xlu0 %1014 }
 0x2e0   :  { %v1045_v28 = vmul.f32 %v2846_v12, %v1020_v0  ;;  %v1019_v2 = vsel %vm235_vm8, %v1013_v4, %v1015_v23  ;;  %2082 = vmatpush1.bf16.msra.mxu0 %v2081_v3  ;;  %2096 = vmatprep.subr.bf16.mxu1 %v2095_v20 }
 0x2e1   :  { %v1046_v6 = vmul.f32 %v2854_v63, %v1019_v2  ;;  %2098 = vmatpush1.bf16.msra.mxu1 %v2097_v15 }
 0x2e2   :  { %v1017_v31 = vpop.permute.xlu1 %1016  ;;  %v2085_v40 = vpack.c.bf16 %v1045_v28, %v2638_v22  ;;  %v2014_v22 = vld [vmem:[%s3227_s3 + $0x6] ss:$8 sm:$0xf] }
 0x2e3   :  { %v1018_v17 = vsel %vm235_vm8, %v1015_v23, %v1017_v31  ;;  %v1021_v32 = vsel %vm235_vm8, %v1017_v31, %v1011_v11  ;;  %v1050_v44 = vpop.permute.xlu0 %1049  ;;  %v2083_v29 = vpack.c.bf16 %v1046_v6, %v2648_v25  ;;  %v2015_v25 = vld [vmem:[%s3227_s3 + $0x7] ss:$8 sm:$0xf]  ;;  %v2895_v5 = vrot.slane %v2014_v22, %v2377_v55  ;;  %v2016_v6 = vld [vmem:[%s3227_s3 + $0x20] ss:$8 sm:$0xf] }
 0x2e4   :  { %v1047_v34 = vmul.f32 %v2859_v24, %v1018_v17  ;;  %v1048_v35 = vmul.f32 %v2865_v41, %v1021_v32  ;;  %v2892_v62 = vrot.slane %v2015_v25, %v2379_v57  ;;  %v2900_v8 = vrot.slane %v2014_v22, %v2381_v58 }
 0x2e5   :  { %2084 = vmatprep.subr.bf16.mxu0 %v2083_v29  ;;  %v2905_v13 = vrot.slane %v2014_v22, %v2369_v46  ;;  %v2910_v21 = vrot.slane %v2015_v25, %v2381_v58  ;;  %v2918_v20 = vrot.slane %v2015_v25, %v2369_v46 }
 0x2e6   :  { %v2101_v50 = vpack.c.bf16 %v1047_v34, %v2650_v37  ;;  %2086 = vmatpush1.bf16.msra.mxu0 %v2085_v40  ;;  %v1052_v51 = vpop.permute.xlu1 %1051  ;;  %v2099_v45 = vpack.c.bf16 %v1048_v35, %v2656_v18  ;;  %v2886_v37 = vrot.slane %v2015_v25, %v2377_v55  ;;  %v2889_v18 = vrot.slane %v2014_v22, %v2379_v57 }
 0x2e7   :  { %v1054_v54 = vpop.permute.xlu0 %1053  ;;  %v1060_v11 = vsel %vm1057_vm5, %v1050_v44, %v1052_v51 }
 0x2e8   :  { %2100 = vmatprep.subr.bf16.mxu1 %v2099_v45  ;;  %v1059_v7 = vsel %vm1057_vm5, %v1052_v51, %v1054_v54  ;;  %v1085_v28 = vmul.f32 %v2895_v5, %v1060_v11  ;;  %v2938_v51 = vrot.slane %v2016_v6, %v2379_v57  ;;  %v2951_v57 = vrot.slane %v2016_v6, %v2369_v46 }
 0x2e9   :  { %2102 = vmatpush1.bf16.msra.mxu1 %v2101_v50  ;;  %v1086_v15 = vmul.f32 %v2889_v18, %v1059_v7 }
 0x2ea   :  { %v1056_v56 = vpop.permute.xlu1 %1055  ;;  %3241 = vst [vmem:[#allocation8_spill] sm:$0xff] %v2938_v51  ;;  %3244 = vst [vmem:[#allocation11_spill] sm:$0xff] %v2951_v57 }
 0x2eb   :  { %v1090_v60 = vpop.permute.xlu0 %1089  ;;  %v1058_v42 = vsel %vm1057_vm5, %v1054_v54, %v1056_v56  ;;  %v1061_v0 = vsel %vm1057_vm5, %v1056_v56, %v1050_v44  ;;  %v2941_v54 = vrot.slane %v2016_v6, %v2377_v55 }
 0x2ec   :  { %v1087_v31 = vmul.f32 %v2900_v8, %v1058_v42  ;;  %v1088_v40 = vmul.f32 %v2905_v13, %v1061_v0  ;;  %v1171_v0 = vld [vmem:[%s3229_s5 + $0x18] sm:$0xff] }
 0x2ed   :  { %3242 = vst [vmem:[#allocation9_spill] sm:$0xff] %v2941_v54 }
 0x2ee   :  { %v1092_v30 = vpop.permute.xlu1 %1091 }
 0x2ef   :  { %v1099_v14 = vsel %vm729_vm14, %v1090_v60, %v1092_v30  ;;  %v1094_v16 = vpop.permute.xlu0 %1093 }
 0x2f0   :  { %v1124_v3 = vmul.f32 %v2886_v37, %v1099_v14  ;;  %v1098_v4 = vsel %vm729_vm14, %v1092_v30, %v1094_v16  ;;  %v2948_v30 = vrot.slane %v2016_v6, %v2381_v58 }
 0x2f1   :  { %v1125_v23 = vmul.f32 %v2892_v62, %v1098_v4  ;;  %v1169_v4 = vld [vmem:[%s3229_s5 + $0x8] sm:$0xff] }
 0x2f2   :  { %v1096_v2 = vpop.permute.xlu1 %1095  ;;  %v2089_v34 = vpack.c.bf16 %v1124_v3, %v1085_v28  ;;  %3243 = vst [vmem:[#allocation10_spill] sm:$0xff] %v2948_v30  ;;  %v1173_v28 = vld [vmem:[%s3229_s5 + $0x28] sm:$0xff] }
 0x2f3   :  { %v1097_v17 = vsel %vm729_vm14, %v1094_v16, %v1096_v2  ;;  %v1100_v32 = vsel %vm729_vm14, %v1096_v2, %v1090_v60  ;;  %v1129_v44 = vpop.permute.xlu0 %1128  ;;  %v2087_v29 = vpack.c.bf16 %v1125_v23, %v1086_v15  ;;  %v1168_v16 = vld [vmem:[%s3229_s5] sm:$0xff]  ;;  %v1170_v15 = vld [vmem:[%s3229_s5 + $0x10] sm:$0xff] }
 0x2f4   :  { %v1126_v35 = vmul.f32 %v2910_v21, %v1097_v17  ;;  %v1127_v50 = vmul.f32 %v2918_v20, %v1100_v32  ;;  %v1172_v23 = vld [vmem:[%s3229_s5 + $0x20] sm:$0xff] }
 0x2f5   :  { %2088 = vmatprep.subr.bf16.mxu0 %v2087_v29 }
 0x2f6   :  { %v2105_v45 = vpack.c.bf16 %v1126_v35, %v1087_v31  ;;  %2090 = vmatpush1.bf16.msra.mxu0 %v2089_v34  ;;  %v1131_v25 = vpop.permute.xlu1 %1130  ;;  %v2103_v22 = vpack.c.bf16 %v1127_v50, %v1088_v40 }
 0x2f7   :  { %v1139_v56 = vsel %vm1136_vm6, %v1129_v44, %v1131_v25  ;;  %v1133_v60 = vpop.permute.xlu0 %1132 }
 0x2f8   :  { %v1138_v7 = vsel %vm1136_vm6, %v1131_v25, %v1133_v60  ;;  %2104 = vmatprep.subr.bf16.mxu1 %v2103_v22  ;;  %v1164_v55 = vmul.f32 %v2941_v54, %v1139_v56 }
 0x2f9   :  { %v1165_v11 = vmul.f32 %v2938_v51, %v1138_v7  ;;  %2106 = vmatpush1.bf16.msra.mxu1 %v2105_v45 }
 0x2fa   :  { %v1135_v14 = vpop.permute.xlu1 %1134 }
 0x2fb   :  { %v1137_v42 = vsel %vm1136_vm6, %v1133_v60, %v1135_v14  ;;  %v1140_v58 = vsel %vm1136_vm6, %v1135_v14, %v1129_v44  ;;  %1245 = vmatprep.subr.mxu0 %v1165_v11 }
 0x2fc   :  { %v1166_v46 = vmul.f32 %v2948_v30, %v1137_v42  ;;  %v1167_v3 = vmul.f32 %v2951_v57, %v1140_v58  ;;  %1246 = vmatpush1.msra.mxu0 %v1164_v55 }
 0x2fd   :  { %2017 = vmatmul.mubr.msk.f32.vlgmr.msra.gmra.mrb[14].mxu0 %vm1210_vm7, %v1168_v16 }
 0x2fe   :  { %1346 = vmatprep.subr.mxu1 %v1167_v3  ;;  %1299 = vmatprep.mubr.f32.mxu0 %v2225_v38 }
 0x2ff   :  { %1347 = vmatpush1.msra.mxu1 %v1166_v46 }
 0x300   :  { %2023 = vmatmul.mubr.msk.f32.vlgmr.msra.gmra.mrb[14].mxu1 %vm1210_vm7, %v1168_v16 }
 0x301   :  { %2018 = vmatmul.mubr.msk.f32.gmra.mrb[16].mxu0 %vm1210_vm7, %v1169_v4  ;;  %1400 = vmatprep.mubr.f32.mxu1 %v2225_v38 }
 0x302   :  { %1305 = vmatprep.mubr.f32.mxu0 %v2225_v38 }
 0x304   :  { %2024 = vmatmul.mubr.msk.f32.gmra.mrb[16].mxu1 %vm1210_vm7, %v1169_v4 }
 0x305   :  { %2019 = vmatmul.mubr.msk.f32.gmra.mrb[18].mxu0 %vm1210_vm7, %v1170_v15  ;;  %1406 = vmatprep.mubr.f32.mxu1 %v2225_v38 }
 0x306   :  { %1311 = vmatprep.mubr.f32.mxu0 %v2225_v38 }
 0x308   :  { %2025 = vmatmul.mubr.msk.f32.gmra.mrb[18].mxu1 %vm1210_vm7, %v1170_v15  ;;  %v1183_v2 = vpop.permute.xlu0 %1182 }
 0x309   :  { %2020 = vmatmul.mubr.msk.f32.gmra.mrb[20].mxu0 %vm1210_vm7, %v1171_v0  ;;  %1412 = vmatprep.mubr.f32.mxu1 %v2225_v38 }
 0x30a   :  { %1317 = vmatprep.mubr.f32.mxu0 %v2225_v38 }
 0x30b   :  { %v1188_v17 = vpop.permute.xlu1 %1187 }
 0x30c   :  { %2026 = vmatmul.mubr.msk.f32.gmra.mrb[20].mxu1 %vm1210_vm7, %v1171_v0 }
 0x30d   :  { %2021 = vmatmul.mubr.msk.f32.gmra.mrb[22].mxu0 %vm1210_vm7, %v1172_v23  ;;  %1418 = vmatprep.mubr.f32.mxu1 %v2225_v38 }
 0x30e   :  { %1323 = vmatprep.mubr.f32.mxu0 %v2225_v38 }
 0x30f   :  { %v1193_v4 = vpop.permute.xlu1 %1192 }
 0x310   :  { %2027 = vmatmul.mubr.msk.f32.gmra.mrb[22].mxu1 %vm1210_vm7, %v1172_v23 }
 0x311   :  { %2022 = vmatmul.mubr.msk.f32.gmra.mrb[24].mxu0 %vm1210_vm7, %v1173_v28  ;;  %1424 = vmatprep.mubr.f32.mxu1 %v2225_v38 }
 0x312   :  { %1556 = vmatprep.mubr.f32.mxu0 %v2225_v38 }
 0x314   :  { %2028 = vmatmul.mubr.msk.f32.gmra.mrb[24].mxu1 %vm1210_vm7, %v1173_v28  ;;  %v1198_v28 = vpop.permute.xlu0 %1197 }
 0x315   :  { %1675 = vmatprep.mubr.f32.mxu1 %v2225_v38 }
 0x3d0   :  { %v1295_v6 = vpop.f32.mrb[14].mxu0 }
 0x3d1   :  { %v1297_v31 = vpop.f32.mrb[15].mxu0  ;;  %v1296_v32 = vadd.f32 %v1295_v6, %v1183_v2 }
 0x3d2   :  { %v1298_v29 = vadd.f32 %v1297_v31, %v1183_v2 }
 0x3d3   :  { %v1396_v44 = vpop.f32.mrb[14].mxu1  ;;  %v1431_v22 = vmax.f32 %v1296_v32, 0.0 }
 0x3d4   :  { %v1301_v40 = vpop.f32.mrb[16].mxu0  ;;  %v1398_v34 = vpop.f32.mrb[15].mxu1  ;;  %v1397_v45 = vadd.f32 %v1396_v44, %v1183_v2  ;;  %v1432_v11 = vmax.f32 %v1298_v29, 0.0 }
 0x3d5   :  { %v1302_v35 = vadd.f32 %v1301_v40, %v1188_v17  ;;  %v1303_v50 = vpop.f32.mrb[17].mxu0  ;;  %v1399_v60 = vadd.f32 %v1398_v34, %v1183_v2 }
 0x3d6   :  { %v1304_v25 = vadd.f32 %v1303_v50, %v1188_v17  ;;  %v1433_v15 = vmax.f32 %v1397_v45, 0.0 }
 0x3d7   :  { %v1435_v56 = vmax.f32 %v1302_v35, 0.0  ;;  %v1402_v7 = vpop.f32.mrb[16].mxu1  ;;  %v1434_v6 = vmax.f32 %v1399_v60, 0.0 }
 0x3d8   :  { %v1436_v55 = vmax.f32 %v1304_v25, 0.0  ;;  %v1403_v14 = vadd.f32 %v1402_v7, %v1188_v17  ;;  %v1307_v16 = vpop.f32.mrb[18].mxu0  ;;  %v1404_v42 = vpop.f32.mrb[17].mxu1 }
 0x3d9   :  { %v2109_v58 = vpack.c.bf16 %v1435_v56, %v1431_v22  ;;  %v1405_v46 = vadd.f32 %v1404_v42, %v1188_v17  ;;  %v1309_v3 = vpop.f32.mrb[19].mxu0  ;;  %v1308_v31 = vadd.f32 %v1307_v16, %v1193_v4 }
 0x3da   :  { %v2107_v0 = vpack.c.bf16 %v1436_v55, %v1432_v11  ;;  %v1437_v23 = vmax.f32 %v1403_v14, 0.0  ;;  %v1310_v2 = vadd.f32 %v1309_v3, %v1193_v4 }
 0x3db   :  { %v1438_v44 = vmax.f32 %v1405_v46, 0.0  ;;  %v1408_v32 = vpop.f32.mrb[18].mxu1  ;;  %v1439_v56 = vmax.f32 %v1308_v31, 0.0 }
 0x3dc   :  { %v2121_v40 = vpack.c.bf16 %v1437_v23, %v1433_v15  ;;  %v1313_v34 = vpop.f32.mrb[20].mxu0  ;;  %v1410_v29 = vpop.f32.mrb[19].mxu1  ;;  %2108 = vmatprep.subr.bf16.mxu0 %v2107_v0  ;;  %v1409_v17 = vadd.f32 %v1408_v32, %v1193_v4  ;;  %v1440_v60 = vmax.f32 %v1310_v2, 0.0 }
 0x3dd   :  { %v2119_v35 = vpack.c.bf16 %v1438_v44, %v1434_v6  ;;  %v1314_v50 = vadd.f32 %v1313_v34, %v1198_v28  ;;  %v1315_v25 = vpop.f32.mrb[21].mxu0  ;;  %2110 = vmatpush1.bf16.msra.mxu0 %v2109_v58  ;;  %v1411_v7 = vadd.f32 %v1410_v29, %v1193_v4  ;;  %v1203_v0 = vpop.permute.xlu1 %1202 }
 0x3de   :  { %v1316_v22 = vadd.f32 %v1315_v25, %v1198_v28  ;;  %v1441_v23 = vmax.f32 %v1409_v17, 0.0  ;;  %v1208_v44 = vpop.permute.xlu0 %1207 }
 0x3df   :  { %v1443_v45 = vmax.f32 %v1314_v50, 0.0  ;;  %v1414_v11 = vpop.f32.mrb[20].mxu1  ;;  %2120 = vmatprep.subr.bf16.mxu1 %v2119_v35  ;;  %v1442_v32 = vmax.f32 %v1411_v7, 0.0 }
 0x3e0   :  { %v1444_v55 = vmax.f32 %v1316_v22, 0.0  ;;  %v1415_v14 = vadd.f32 %v1414_v11, %v1198_v28  ;;  %v1319_v16 = vpop.f32.mrb[22].mxu0  ;;  %v1416_v42 = vpop.f32.mrb[21].mxu1  ;;  %2122 = vmatpush1.bf16.msra.mxu1 %v2121_v40 }
 0x3e1   :  { %v2113_v46 = vpack.c.bf16 %v1443_v45, %v1439_v56  ;;  %v1417_v3 = vadd.f32 %v1416_v42, %v1198_v28  ;;  %v1321_v15 = vpop.f32.mrb[23].mxu0  ;;  %v1320_v31 = vadd.f32 %v1319_v16, %v1203_v0 }
 0x3e2   :  { %v2111_v6 = vpack.c.bf16 %v1444_v55, %v1440_v60  ;;  %v1445_v58 = vmax.f32 %v1415_v14, 0.0  ;;  %v1322_v35 = vadd.f32 %v1321_v15, %v1203_v0 }
 0x3e3   :  { %v1446_v34 = vmax.f32 %v1417_v3, 0.0  ;;  %v1420_v4 = vpop.f32.mrb[22].mxu1  ;;  %v1447_v45 = vmax.f32 %v1320_v31, 0.0  ;;  %v1457_v31 = vld [vmem:[%s3231_s7 + $0x10] sm:$0xff] }
 0x3e4   :  { %v2125_v29 = vpack.c.bf16 %v1445_v58, %v1441_v23  ;;  %v1325_v2 = vpop.f32.mrb[24].mxu0  ;;  %v1422_v50 = vpop.f32.mrb[23].mxu1  ;;  %2112 = vmatprep.subr.bf16.mxu0 %v2111_v6  ;;  %v1421_v28 = vadd.f32 %v1420_v4, %v1203_v0  ;;  %v1448_v7 = vmax.f32 %v1322_v35, 0.0  ;;  %v1458_v4 = vld [vmem:[%s3231_s7 + $0x18] sm:$0xff]  ;;  %v1460_v35 = vld [vmem:[%s3231_s7 + $0x28] sm:$0xff] }
 0x3e5   :  { %v2123_v25 = vpack.c.bf16 %v1446_v34, %v1442_v32  ;;  %v1326_v22 = vadd.f32 %v1325_v2, %v1208_v44  ;;  %v1327_v40 = vpop.f32.mrb[25].mxu0  ;;  %2114 = vmatpush1.bf16.msra.mxu0 %v2113_v46  ;;  %v1423_v11 = vadd.f32 %v1422_v50, %v1203_v0  ;;  %v1455_v0 = vld [vmem:[%s3231_s7] sm:$0xff]  ;;  %v1461_v2 = vld [vmem:[%s3231_s7 + $0x30] sm:$0xff]  ;;  %v1462_v50 = vld [vmem:[%s3231_s7 + $0x38] sm:$0xff] }
 0x3e6   :  { %v1328_v56 = vadd.f32 %v1327_v40, %v1208_v44  ;;  %v1449_v15 = vmax.f32 %v1421_v28, 0.0 }
 0x3e7   :  { %v1451_v17 = vmax.f32 %v1326_v22, 0.0  ;;  %v1426_v60 = vpop.f32.mrb[24].mxu1  ;;  %2124 = vmatprep.subr.bf16.mxu1 %v2123_v25  ;;  %v1450_v58 = vmax.f32 %v1423_v11, 0.0  ;;  %v1463_v25 = vld [vmem:[%s3231_s7 + $0x40] sm:$0xff] }
 0x3e8   :  { %v1452_v55 = vmax.f32 %v1328_v56, 0.0  ;;  %v1427_v14 = vadd.f32 %v1426_v60, %v1208_v44  ;;  %v1428_v16 = vpop.f32.mrb[25].mxu1  ;;  %2126 = vmatpush1.bf16.msra.mxu1 %v2125_v29  ;;  %v1459_v29 = vld [vmem:[%s3231_s7 + $0x20] sm:$0xff] }
 0x3e9   :  { %v2117_v42 = vpack.c.bf16 %v1451_v17, %v1447_v45  ;;  %v1429_v3 = vadd.f32 %v1428_v16, %v1208_v44  ;;  %v1456_v44 = vld [vmem:[%s3231_s7 + $0x8] sm:$0xff] }
 0x3ea   :  { %v2115_v23 = vpack.c.bf16 %v1452_v55, %v1448_v7  ;;  %v1453_v6 = vmax.f32 %v1427_v14, 0.0 }
 0x3eb   :  { %v1454_v32 = vmax.f32 %v1429_v3, 0.0 }
 0x3ec   :  { %v2129_v46 = vpack.c.bf16 %v1453_v6, %v1449_v15  ;;  %2116 = vmatprep.subr.bf16.mxu0 %v2115_v23 }
 0x3ed   :  { %v2127_v34 = vpack.c.bf16 %v1454_v32, %v1450_v58  ;;  %2118 = vmatpush1.bf16.msra.mxu0 %v2117_v42 }
 0x3ef   :  { %2128 = vmatprep.subr.bf16.mxu1 %v2127_v34 }
 0x3f0   :  { %2029 = vmatmul.mubr.msk.f32.vlgmr.msra.gmra.mrb[26].mxu0 %vm1464_vm9, %v1455_v0  ;;  %2130 = vmatpush1.bf16.msra.mxu1 %v2129_v46 }
 0x3f1   :  { %1562 = vmatprep.mubr.f32.mxu0 %v2225_v38 }
 0x3f3   :  { %2038 = vmatmul.mubr.msk.f32.vlgmr.msra.gmra.mrb[26].mxu1 %vm1464_vm9, %v1455_v0 }
 0x3f4   :  { %2030 = vmatmul.mubr.msk.f32.gmra.mrb[28].mxu0 %vm1464_vm9, %v1456_v44  ;;  %1681 = vmatprep.mubr.f32.mxu1 %v2225_v38 }
 0x3f5   :  { %1568 = vmatprep.mubr.f32.mxu0 %v2225_v38 }
 0x3f7   :  { %2039 = vmatmul.mubr.msk.f32.gmra.mrb[28].mxu1 %vm1464_vm9, %v1456_v44 }
 0x3f8   :  { %2031 = vmatmul.mubr.msk.f32.gmra.mrb[30].mxu0 %vm1464_vm9, %v1457_v31  ;;  %1687 = vmatprep.mubr.f32.mxu1 %v2225_v38 }
 0x3f9   :  { %1574 = vmatprep.mubr.f32.mxu0 %v2225_v38 }
 0x3fb   :  { %2040 = vmatmul.mubr.msk.f32.gmra.mrb[30].mxu1 %vm1464_vm9, %v1457_v31 }
 0x3fc   :  { %2032 = vmatmul.mubr.msk.f32.gmra.mrb[32].mxu0 %vm1464_vm9, %v1458_v4  ;;  %1693 = vmatprep.mubr.f32.mxu1 %v2225_v38 }
 0x3fd   :  { %1580 = vmatprep.mubr.f32.mxu0 %v2225_v38 }
 0x3ff   :  { %2041 = vmatmul.mubr.msk.f32.gmra.mrb[32].mxu1 %vm1464_vm9, %v1458_v4 }
 0x400   :  { %2033 = vmatmul.mubr.msk.f32.gmra.mrb[34].mxu0 %vm1464_vm9, %v1459_v29  ;;  %1699 = vmatprep.mubr.f32.mxu1 %v2225_v38 }
 0x401   :  { %1586 = vmatprep.mubr.f32.mxu0 %v2225_v38 }
 0x403   :  { %2042 = vmatmul.mubr.msk.f32.gmra.mrb[34].mxu1 %vm1464_vm9, %v1459_v29 }
 0x404   :  { %2034 = vmatmul.mubr.msk.f32.gmra.mrb[36].mxu0 %vm1464_vm9, %v1460_v35  ;;  %1705 = vmatprep.mubr.f32.mxu1 %v2225_v38 }
 0x405   :  { %1592 = vmatprep.mubr.f32.mxu0 %v2225_v38 }
 0x407   :  { %2043 = vmatmul.mubr.msk.f32.gmra.mrb[36].mxu1 %vm1464_vm9, %v1460_v35 }
 0x408   :  { %2035 = vmatmul.mubr.msk.f32.gmra.mrb[38].mxu0 %vm1464_vm9, %v1461_v2  ;;  %1711 = vmatprep.mubr.f32.mxu1 %v2225_v38 }
 0x409   :  { %1598 = vmatprep.mubr.f32.mxu0 %v2225_v38 }
 0x40b   :  { %2044 = vmatmul.mubr.msk.f32.gmra.mrb[38].mxu1 %vm1464_vm9, %v1461_v2 }
 0x40c   :  { %2036 = vmatmul.mubr.msk.f32.gmra.mrb[40].mxu0 %vm1464_vm9, %v1462_v50  ;;  %1717 = vmatprep.mubr.f32.mxu1 %v2225_v38 }
 0x40d   :  { %1604 = vmatprep.mubr.f32.mxu0 %v2225_v38 }
 0x40f   :  { %2045 = vmatmul.mubr.msk.f32.gmra.mrb[40].mxu1 %vm1464_vm9, %v1462_v50 }
 0x410   :  { %2037 = vmatmul.mubr.msk.f32.gmra.mrb[42].mxu0 %vm1464_vm9, %v1463_v25  ;;  %1723 = vmatprep.mubr.f32.mxu1 %v2225_v38 }
 0x413   :  { %2046 = vmatmul.mubr.msk.f32.gmra.mrb[42].mxu1 %vm1464_vm9, %v1463_v25 }
 0x4c3   :  { %v1558_v22 = vpop.f32.mrb[26].mxu0 }
 0x4c4   :  { %1730 = vrot.lane.b32.xlu1 %v1558_v22, %s2234_s26  ;;  %v1560_v40 = vpop.f32.mrb[27].mxu0 }
 0x4c5   :  { %1732 = vrot.lane.b32.xlu0 %v1560_v40, %s2234_s26 }
 0x4c6   :  { %v1677_v28 = vpop.f32.mrb[26].mxu1 }
 0x4c7   :  { %v1679_v56 = vpop.f32.mrb[27].mxu1  ;;  %v1564_v45 = vpop.f32.mrb[28].mxu0 }
 0x4c8   :  { %1734 = vrot.lane.b32.xlu1 %v1677_v28, %s2234_s26  ;;  %v1566_v17 = vpop.f32.mrb[29].mxu0 }
 0x4c9   :  { %1736 = vrot.lane.b32.xlu0 %v1679_v56, %s2234_s26 }
 0x4ca   :  { %v1683_v11 = vpop.f32.mrb[28].mxu1 }
 0x4cb   :  { %v1685_v60 = vpop.f32.mrb[29].mxu1  ;;  %v1570_v7 = vpop.f32.mrb[30].mxu0 }
 0x4cc   :  { %1746 = vrot.lane.b32.xlu1 %v1564_v45, %s2230_s23  ;;  %v1572_v38 = vpop.f32.mrb[31].mxu0 }
 0x4cd   :  { %1748 = vrot.lane.b32.xlu0 %v1566_v17, %s2230_s23  ;;  %v3104_v17 = vpop.permute.xlu1 %1893 }
 0x4ce   :  { %v1689_v55 = vpop.f32.mrb[30].mxu1  ;;  %3245 = vst [vmem:[#allocation12_spill] sm:$0xff] %v3104_v17 }
 0x4cf   :  { %v1691_v14 = vpop.f32.mrb[31].mxu1  ;;  %v1576_v16 = vpop.f32.mrb[32].mxu0 }
 0x4d0   :  { %1750 = vrot.lane.b32.xlu1 %v1683_v11, %s2230_s23  ;;  %v1578_v42 = vpop.f32.mrb[33].mxu0 }
 0x4d1   :  { %1752 = vrot.lane.b32.xlu0 %v1685_v60, %s2230_s23 }
 0x4d2   :  { %v1695_v3 = vpop.f32.mrb[32].mxu1 }
 0x4d3   :  { %v1697_v15 = vpop.f32.mrb[33].mxu1  ;;  %v3072_v23 = vpop.f32.mrb[34].mxu0 }
 0x4d4   :  { %1766 = vrot.lane.b32.xlu1 %v1570_v7, %s2235_s29  ;;  %v3075_v6 = vpop.f32.mrb[35].mxu0 }
 0x4d5   :  { %1768 = vrot.lane.b32.xlu0 %v1572_v38, %s2235_s29 }
 0x4d6   :  { %v3078_v58 = vpop.f32.mrb[34].mxu1 }
 0x4d7   :  { %v1588_v32 = vpop.f32.mrb[36].mxu0  ;;  %v3080_v46 = vpop.f32.mrb[35].mxu1 }
 0x4d8   :  { %1770 = vrot.lane.b32.xlu1 %v1689_v55, %s2235_s29  ;;  %v1590_v34 = vpop.f32.mrb[37].mxu0 }
 0x4d9   :  { %1772 = vrot.lane.b32.xlu0 %v1691_v14, %s2235_s29 }
 0x4da   :  { %v1707_v0 = vpop.f32.mrb[36].mxu1 }
 0x4db   :  { %v1709_v44 = vpop.f32.mrb[37].mxu1  ;;  %v1594_v31 = vpop.f32.mrb[38].mxu0 }
 0x4dc   :  { %1786 = vrot.lane.b32.xlu1 %v1576_v16, %s2222_s27  ;;  %v1596_v4 = vpop.f32.mrb[39].mxu0 }
 0x4dd   :  { %1788 = vrot.lane.b32.xlu0 %v1578_v42, %s2222_s27 }
 0x4de   :  { %v1713_v29 = vpop.f32.mrb[38].mxu1 }
 0x4df   :  { %v1715_v35 = vpop.f32.mrb[39].mxu1  ;;  %v1600_v2 = vpop.f32.mrb[40].mxu0 }
 0x4e0   :  { %1790 = vrot.lane.b32.xlu1 %v1695_v3, %s2222_s27  ;;  %v1602_v50 = vpop.f32.mrb[41].mxu0 }
 0x4e1   :  { %1792 = vrot.lane.b32.xlu0 %v1697_v15, %s2222_s27 }
 0x4e2   :  { %v1719_v25 = vpop.f32.mrb[40].mxu1 }
 0x4e3   :  { %v1721_v22 = vpop.f32.mrb[41].mxu1  ;;  %v1606_v40 = vpop.f32.mrb[42].mxu0 }
 0x4e4   :  { %1810 = vrot.lane.b32.xlu1 %v1588_v32, %s2223_s28  ;;  %v1608_v28 = vpop.f32.mrb[43].mxu0 }
 0x4e5   :  { %1812 = vrot.lane.b32.xlu0 %v1590_v34, %s2223_s28 }
 0x4e6   :  { %v1725_v56 = vpop.f32.mrb[42].mxu1 }
 0x4e7   :  { %v1727_v45 = vpop.f32.mrb[43].mxu1 }
 0x4e8   :  { %1814 = vrot.lane.b32.xlu1 %v1707_v0, %s2223_s28 }
 0x4e9   :  { %1816 = vrot.lane.b32.xlu0 %v1709_v44, %s2223_s28 }
 0x4ec   :  { %1830 = vrot.lane.b32.xlu1 %v1594_v31, %s2236_s30 }
 0x4ed   :  { %1832 = vrot.lane.b32.xlu0 %v1596_v4, %s2236_s30 }
 0x4f0   :  { %1834 = vrot.lane.b32.xlu1 %v1713_v29, %s2236_s30 }
 0x4f1   :  { %1836 = vrot.lane.b32.xlu0 %v1715_v35, %s2236_s30 }
 0x4f4   :  { %1850 = vrot.lane.b32.xlu1 %v1600_v2, %s2231_s24 }
 0x4f5   :  { %1852 = vrot.lane.b32.xlu0 %v1602_v50, %s2231_s24 }
 0x4f8   :  { %1854 = vrot.lane.b32.xlu1 %v1719_v25, %s2231_s24 }
 0x4f9   :  { %1856 = vrot.lane.b32.xlu0 %v1721_v22, %s2231_s24 }
 0x4fc   :  { %1872 = vrot.lane.b32.xlu1 %v1608_v28, %s2237_s1 }
 0x4fd   :  { %1870 = vrot.lane.b32.xlu0 %v1606_v40, %s2237_s1 }
 0x500   :  { %1876 = vrot.lane.b32.xlu1 %v1727_v45, %s2237_s1 }
 0x501   :  { %1874 = vrot.lane.b32.xlu0 %v1725_v56, %s2237_s1 }
 0x536   :  { %v1731_v11 = vpop.permute.xlu1 %1730 }
 0x537   :  { %v1733_v60 = vpop.permute.xlu0 %1732 }
 0x538   :  { %v1740_v28 = vsel %vm861_vm2, %v1731_v11, %v1733_v60 }
 0x53a   :  { %v1735_v7 = vpop.permute.xlu1 %1734 }
 0x53b   :  { %v1737_v38 = vpop.permute.xlu0 %1736 }
 0x53c   :  { %v1741_v25 = vsel %vm861_vm2, %v1737_v38, %v1731_v11  ;;  %v1743_v11 = vmul.f32 %v1740_v28, %v2745_v53 }
 0x53d   :  { %v1742_v51 = vmul.f32 %v1741_v25, %v2753_v1 }
 0x53e   :  { %v1747_v55 = vpop.permute.xlu1 %1746 }
 0x53f   :  { %v1749_v14 = vpop.permute.xlu0 %1748 }
 0x540   :  { %v1756_v22 = vsel %vm681_vm13, %v1747_v55, %v1749_v14 }
 0x541   :  { %v1759_v17 = vmul.f32 %v1756_v22, %v2748_v26  ;;  %v1738_v26 = vsel %vm861_vm2, %v1735_v7, %v1737_v38 }
 0x542   :  { %v1751_v16 = vpop.permute.xlu1 %1750 }
 0x543   :  { %v1753_v42 = vpop.permute.xlu0 %1752  ;;  %v1755_v30 = vsel %vm681_vm13, %v1749_v14, %v1751_v16  ;;  %v1763_v28 = vadd.f32 %v1759_v17, %v1743_v11 }
 0x544   :  { %v1757_v2 = vsel %vm681_vm13, %v1753_v42, %v1747_v55 }
 0x545   :  { %v1758_v56 = vmul.f32 %v1757_v2, %v2764_v59  ;;  %v1739_v59 = vsel %vm861_vm2, %v1733_v60, %v1735_v7  ;;  %v1754_v2 = vsel %vm681_vm13, %v1751_v16, %v1753_v42 }
 0x546   :  { %v1767_v3 = vpop.permute.xlu1 %1766  ;;  %v1744_v42 = vmul.f32 %v1739_v59, %v2774_v10  ;;  %v1761_v7 = vmul.f32 %v1754_v2, %v2771_v9 }
 0x547   :  { %v1769_v15 = vpop.permute.xlu0 %1768  ;;  %v1762_v25 = vadd.f32 %v1758_v56, %v1742_v51 }
 0x548   :  { %v1776_v57 = vsel %vm939_vm3, %v1767_v3, %v1769_v15 }
 0x549   :  { %v1779_v53 = vmul.f32 %v1776_v57, %v2800_v39 }
 0x54a   :  { %v1771_v32 = vpop.permute.xlu1 %1770 }
 0x54b   :  { %v1773_v34 = vpop.permute.xlu0 %1772  ;;  %v1775_v60 = vsel %vm939_vm3, %v1769_v15, %v1771_v32  ;;  %v1745_v15 = vmul.f32 %v1738_v26, %v2756_v47 }
 0x54c   :  { %v1777_v45 = vsel %vm939_vm3, %v1773_v34, %v1767_v3  ;;  %v1760_v3 = vmul.f32 %v1755_v30, %v2761_v61  ;;  %v1774_v16 = vsel %vm939_vm3, %v1771_v32, %v1773_v34  ;;  %v1783_v32 = vadd.f32 %v1779_v53, %v1763_v28 }
 0x54d   :  { %v1778_v14 = vmul.f32 %v1777_v45, %v2808_v27  ;;  %v1781_v10 = vmul.f32 %v1774_v16, %v2811_v33  ;;  %v1765_v34 = vadd.f32 %v1761_v7, %v1745_v15 }
 0x54e   :  { %v1787_v0 = vpop.permute.xlu1 %1786  ;;  %v1764_v17 = vadd.f32 %v1760_v3, %v1744_v42 }
 0x54f   :  { %v1789_v44 = vpop.permute.xlu0 %1788  ;;  %v1782_v51 = vadd.f32 %v1778_v14, %v1762_v25  ;;  %v1785_v47 = vadd.f32 %v1781_v10, %v1765_v34 }
 0x550   :  { %v1796_v22 = vsel %vm195_vm4, %v1787_v0, %v1789_v44 }
 0x551   :  { %v1799_v30 = vmul.f32 %v1796_v22, %v2803_v19 }
 0x552   :  { %v1791_v31 = vpop.permute.xlu1 %1790 }
 0x553   :  { %v1793_v4 = vpop.permute.xlu0 %1792  ;;  %v1795_v39 = vsel %vm195_vm4, %v1789_v44, %v1791_v31 }
 0x554   :  { %v1797_v55 = vsel %vm195_vm4, %v1793_v4, %v1787_v0  ;;  %v1794_v57 = vsel %vm195_vm4, %v1791_v31, %v1793_v4  ;;  %v1800_v0 = vmul.f32 %v1795_v39, %v2816_v48  ;;  %v1803_v31 = vadd.f32 %v1799_v30, %v1783_v32  ;;  %v3246_v39 = vld [vmem:[#allocation9_spill] sm:$0xff] }
 0x555   :  { %v1798_v27 = vmul.f32 %v1797_v55, %v2819_v49  ;;  %v1780_v49 = vmul.f32 %v1775_v60, %v2832_v36  ;;  %v1801_v19 = vmul.f32 %v1794_v57, %v2826_v52 }
 0x556   :  { %v1811_v29 = vpop.permute.xlu1 %1810  ;;  %v1807_v3 = vadd.f32 %v1803_v31, %v3075_v6 }
 0x557   :  { %v1813_v35 = vpop.permute.xlu0 %1812  ;;  %v1802_v9 = vadd.f32 %v1798_v27, %v1782_v51  ;;  %v1784_v45 = vadd.f32 %v1780_v49, %v1764_v17  ;;  %v1805_v2 = vadd.f32 %v1801_v19, %v1785_v47  ;;  %v3248_v19 = vld [vmem:[#allocation12_spill] sm:$0xff] }
 0x558   :  { %v1820_v44 = vsel %vm235_vm8, %v1811_v29, %v1813_v35 }
 0x559   :  { %v1806_v55 = vadd.f32 %v1802_v9, %v3072_v23  ;;  %v1822_v48 = vmul.f32 %v1820_v44, %v2846_v12  ;;  %v1804_v59 = vadd.f32 %v1800_v0, %v1784_v45 }
 0x55a   :  { %v1815_v50 = vpop.permute.xlu1 %1814 }
 0x55b   :  { %v1817_v40 = vpop.permute.xlu0 %1816  ;;  %v1819_v36 = vsel %vm235_vm8, %v1813_v35, %v1815_v50  ;;  %v1826_v53 = vadd.f32 %v1822_v48, %v1806_v55 }
 0x55c   :  { %v1818_v52 = vsel %vm235_vm8, %v1815_v50, %v1817_v40  ;;  %v1821_v11 = vsel %vm235_vm8, %v1817_v40, %v1811_v29  ;;  %v1823_v23 = vmul.f32 %v1819_v36, %v2854_v63 }
 0x55d   :  { %v1824_v29 = vmul.f32 %v1818_v52, %v2859_v24  ;;  %v1825_v40 = vmul.f32 %v1821_v11, %v2865_v41  ;;  %v1809_v24 = vadd.f32 %v1805_v2, %v3080_v46 }
 0x55e   :  { %v1831_v54 = vpop.permute.xlu1 %1830  ;;  %v1827_v27 = vadd.f32 %v1823_v23, %v1807_v3 }
 0x55f   :  { %v1833_v1 = vpop.permute.xlu0 %1832 }
 0x560   :  { %v1840_v33 = vsel %vm1057_vm5, %v1831_v54, %v1833_v1 }
 0x561   :  { %v1842_v12 = vmul.f32 %v1840_v33, %v2895_v5 }
 0x562   :  { %v1835_v61 = vpop.permute.xlu1 %1834 }
 0x563   :  { %v1837_v38 = vpop.permute.xlu0 %1836  ;;  %v1839_v14 = vsel %vm1057_vm5, %v1833_v1, %v1835_v61  ;;  %v1846_v42 = vadd.f32 %v1842_v12, %v1826_v53 }
 0x564   :  { %v1841_v50 = vsel %vm1057_vm5, %v1837_v38, %v1831_v54  ;;  %v1838_v1 = vsel %vm1057_vm5, %v1835_v61, %v1837_v38  ;;  %v1843_v6 = vmul.f32 %v1839_v14, %v2889_v18  ;;  %v1808_v54 = vadd.f32 %v1804_v59, %v3078_v58 }
 0x565   :  { %v1845_v41 = vmul.f32 %v1841_v50, %v2905_v13  ;;  %v1844_v28 = vmul.f32 %v1838_v1, %v2900_v8  ;;  %v1829_v61 = vadd.f32 %v1825_v40, %v1809_v24 }
 0x566   :  { %v1851_v56 = vpop.permute.xlu1 %1850  ;;  %v1828_v7 = vadd.f32 %v1824_v29, %v1808_v54  ;;  %v1847_v46 = vadd.f32 %v1843_v6, %v1827_v27 }
 0x567   :  { %v1853_v4 = vpop.permute.xlu0 %1852  ;;  %v1849_v38 = vadd.f32 %v1845_v41, %v1829_v61 }
 0x568   :  { %v1860_v35 = vsel %vm729_vm14, %v1851_v56, %v1853_v4  ;;  %v1848_v49 = vadd.f32 %v1844_v28, %v1828_v7 }
 0x569   :  { %v1862_v63 = vmul.f32 %v1860_v35, %v2886_v37 }
 0x56a   :  { %v1855_v26 = vpop.permute.xlu1 %1854 }
 0x56b   :  { %v1857_v25 = vpop.permute.xlu0 %1856  ;;  %v1859_v22 = vsel %vm729_vm14, %v1853_v4, %v1855_v26  ;;  %v1866_v13 = vadd.f32 %v1862_v63, %v1846_v42  ;;  %v3250_v4 = vld [vmem:[#allocation10_spill] sm:$0xff] }
 0x56c   :  { %v1861_v5 = vsel %vm729_vm14, %v1857_v25, %v1851_v56  ;;  %v1858_v60 = vsel %vm729_vm14, %v1855_v26, %v1857_v25  ;;  %v1863_v18 = vmul.f32 %v1859_v22, %v2892_v62  ;;  %v3249_v56 = vld [vmem:[#allocation8_spill] sm:$0xff] }
 0x56d   :  { %v1865_v51 = vmul.f32 %v1861_v5, %v2918_v20  ;;  %v1864_v30 = vmul.f32 %v1858_v60, %v2910_v21  ;;  %v3247_v20 = vld [vmem:[#allocation11_spill] sm:$0xff] }
 0x56e   :  { %v1873_v16 = vpop.permute.xlu1 %1872  ;;  %v1867_v8 = vadd.f32 %v1863_v18, %v1847_v46 }
 0x56f   :  { %v1871_v37 = vpop.permute.xlu0 %1870  ;;  %v1869_v32 = vadd.f32 %v1865_v51, %v1849_v38  ;;  %v1868_v0 = vadd.f32 %v1864_v30, %v1848_v49 }
 0x570   :  { %v1880_v58 = vsel %vm1136_vm6, %v1871_v37, %v1873_v16 }
 0x571   :  { %v1882_v57 = vmul.f32 %v1880_v58, %v3246_v39 }
 0x572   :  { %v1877_v15 = vpop.permute.xlu1 %1876 }
 0x573   :  { %v1886_v10 = vadd.f32 %v1882_v57, %v1866_v13  ;;  %v1881_v62 = vsel %vm1136_vm6, %v1877_v15, %v1871_v37  ;;  %v1875_v17 = vpop.permute.xlu0 %1874 }
 0x574   :  { %v1885_v9 = vmul.f32 %v1881_v62, %v3247_v20  ;;  %v1878_v34 = vsel %vm1136_vm6, %v1875_v17, %v1877_v15  ;;  %v1879_v21 = vsel %vm1136_vm6, %v1873_v16, %v1875_v17 }
 0x575   :  { %v1896_v44 = vadd.f32 %v3248_v19, %v1886_v10  ;;  %v1883_v31 = vmul.f32 %v1879_v21, %v3249_v56  ;;  %v1884_v45 = vmul.f32 %v1878_v34, %v3250_v4 }
 0x576   :  { %v1889_v47 = vadd.f32 %v1885_v9, %v1869_v32 }
 0x577   :  { %v1900_v36 = vsel %vm96_vm0, %v1896_v44, -inf  ;;  %v1887_v33 = vadd.f32 %v1883_v31, %v1867_v8  ;;  %v1888_v55 = vadd.f32 %v1884_v45, %v1868_v0 }
 0x578   :  { %v1901_v48 = vrot.slane %v1900_v36, 4  ;;  %v1899_v52 = vadd.f32 %v3248_v19, %v1889_v47 }
 0x579   :  { %v1897_v11 = vadd.f32 %v3248_v19, %v1887_v33  ;;  %v1898_v43 = vadd.f32 %v3248_v19, %v1888_v55 }
 0x57a   :  { %v1902_v59 = vmax.f32 %v1900_v36, %v1901_v48  ;;  %v1921_v2 = vsel %vm96_vm0, %v1899_v52, -inf }
 0x57b   :  { %v1922_v14 = vrot.slane %v1921_v2, 4  ;;  %v1907_v35 = vsel %vm96_vm0, %v1897_v11, -inf  ;;  %v1914_v26 = vsel %vm96_vm0, %v1898_v43, -inf }
 0x57c   :  { %v1903_v3 = vrot.slane %v1902_v59, 2  ;;  %v1908_v23 = vrot.slane %v1907_v35, 4  ;;  %v1915_v12 = vrot.slane %v1914_v26, 4 }
 0x57d   :  { %v1923_v50 = vmax.f32 %v1921_v2, %v1922_v14 }
 0x57e   :  { %v1904_v25 = vmax.f32 %v1902_v59, %v1903_v3  ;;  %v1909_v29 = vmax.f32 %v1907_v35, %v1908_v23  ;;  %v1916_v40 = vmax.f32 %v1914_v26, %v1915_v12 }
 0x57f   :  { %v1924_v1 = vrot.slane %v1923_v50, 2 }
 0x580   :  { %v1905_v22 = vrot.slane %v1904_v25, 1  ;;  %v1910_v53 = vrot.slane %v1909_v29, 2  ;;  %v1917_v6 = vrot.slane %v1916_v40, 2 }
 0x581   :  { %v1925_v63 = vmax.f32 %v1923_v50, %v1924_v1 }
 0x582   :  { %v1906_v5 = vmax.f32 %v1904_v25, %v1905_v22  ;;  %v1911_v54 = vmax.f32 %v1909_v29, %v1910_v53  ;;  %v1918_v24 = vmax.f32 %v1916_v40, %v1917_v6 }
 0x583   :  { %v1926_v41 = vrot.slane %v1925_v63, 1 }
 0x584   :  { %v1928_v60 = vsub.f32 %v1896_v44, %v1906_v5  ;;  %v1912_v16 = vrot.slane %v1911_v54, 1  ;;  %v1919_v27 = vrot.slane %v1918_v24, 1 }
 0x585   :  { %v1927_v42 = vmax.f32 %v1925_v63, %v1926_v41 }
 0x586   :  { %v1932_v28 = vmul.f32 1.442695, %v1928_v60  ;;  %v1913_v18 = vmax.f32 %v1911_v54, %v1912_v16  ;;  %v1920_v37 = vmax.f32 %v1918_v24, %v1919_v27 }
 0x587   :  { %v1931_v7 = vsub.f32 %v1899_v52, %v1927_v42 }
 0x588   :  { %2154 = vpow2.f32 %v1932_v28  ;;  %v1929_v61 = vsub.f32 %v1897_v11, %v1913_v18  ;;  %v1930_v51 = vsub.f32 %v1898_v43, %v1920_v37 }
 0x589   :  { %v1938_v58 = vmul.f32 1.442695, %v1931_v7 }
 0x58a   :  { %v1934_v46 = vmul.f32 1.442695, %v1929_v61  ;;  %v1936_v13 = vmul.f32 1.442695, %v1930_v51 }
 0x58b   :  { %2156 = vpow2.f32 %v1938_v58 }
 0x58c   :  { %2158 = vpow2.f32 %v1934_v46 }
 0x58d   :  { %2160 = vpow2.f32 %v1936_v13 }
 0x592   :  { %v2155_v30 = vpop.eup %2154 }
 0x593   :  { %v1940_v39 = vsel %vm96_vm0, %v2155_v30, 0.0 }
 0x594   :  { %v1941_v57 = vrot.slane %v1940_v39, 4 }
 0x595   :  { %v2157_v38 = vpop.eup %2156 }
 0x596   :  { %v2159_v15 = vpop.eup %2158  ;;  %v1942_v49 = vadd.f32 %v1941_v57, %v1940_v39  ;;  %v1961_v8 = vsel %vm96_vm0, %v2157_v38, 0.0 }
 0x597   :  { %v2161_v10 = vpop.eup %2160  ;;  %v1962_v62 = vrot.slane %v1961_v8, 4  ;;  %v1947_v17 = vsel %vm96_vm0, %v2159_v15, 0.0 }
 0x598   :  { %v1943_v32 = vrot.slane %v1942_v49, 2  ;;  %v1948_v20 = vrot.slane %v1947_v17, 4  ;;  %v1954_v9 = vsel %vm96_vm0, %v2161_v10, 0.0 }
 0x599   :  { %v1963_v34 = vadd.f32 %v1962_v62, %v1961_v8  ;;  %v1955_v21 = vrot.slane %v1954_v9, 4 }
 0x59a   :  { %v1944_v0 = vadd.f32 %v1943_v32, %v1942_v49  ;;  %v1949_v19 = vadd.f32 %v1948_v20, %v1947_v17 }
 0x59b   :  { %v1964_v44 = vrot.slane %v1963_v34, 2  ;;  %v1956_v56 = vadd.f32 %v1955_v21, %v1954_v9 }
 0x59c   :  { %v1945_v31 = vrot.slane %v1944_v0, 1  ;;  %v1950_v4 = vrot.slane %v1949_v19, 2 }
 0x59d   :  { %v1965_v45 = vadd.f32 %v1964_v44, %v1963_v34  ;;  %v1957_v47 = vrot.slane %v1956_v56, 2 }
 0x59e   :  { %v1946_v36 = vadd.f32 %v1945_v31, %v1944_v0  ;;  %v1951_v33 = vadd.f32 %v1950_v4, %v1949_v19 }
 0x59f   :  { %v1966_v55 = vrot.slane %v1965_v45, 1  ;;  %v1958_v48 = vadd.f32 %v1957_v47, %v1956_v56 }
 0x5a0   :  { %v1952_v52 = vrot.slane %v1951_v33, 1  ;;  %2162 = vrcp.f32 %v1946_v36 }
 0x5a1   :  { %v1967_v11 = vadd.f32 %v1966_v55, %v1965_v45  ;;  %v1959_v43 = vrot.slane %v1958_v48, 1 }
 0x5a2   :  { %v1953_v59 = vadd.f32 %v1952_v52, %v1951_v33 }
 0x5a3   :  { %2164 = vrcp.f32 %v1967_v11  ;;  %v1960_v2 = vadd.f32 %v1959_v43, %v1958_v48 }
 0x5a4   :  { %2166 = vrcp.f32 %v1953_v59 }
 0x5a5   :  { %2168 = vrcp.f32 %v1960_v2 }
 0x5aa   :  { %v2163_v14 = vpop.eup %2162 }
 0x5ab   :  { %v1972_v12 = vmul.f32 %v2163_v14, %v2155_v30 }
 0x5ad   :  { %v2165_v35 = vpop.eup %2164 }
 0x5ae   :  { %v2167_v26 = vpop.eup %2166  ;;  %v1975_v3 = vmul.f32 %v2165_v35, %v2157_v38 }
 0x5af   :  { %v2169_v23 = vpop.eup %2168  ;;  %v1973_v50 = vmul.f32 %v2167_v26, %v2159_v15 }
 0x5b0   :  { %v1974_v25 = vmul.f32 %v2169_v23, %v2161_v10 }
 0x5b1   :  { %v1980_v29 = vcombine.low %v1972_v12, %v1973_v50 }
 0x5b2   :  { %v1981_v40 = vcombine.low %v1974_v25, %v1975_v3 }
 0x5b3   :  { %1984 = vst [vmem:[%s3233_s9] sm:$0x77] %v1980_v29 }
 0x5b4   :  { %1985 = vst [vmem:[%s3233_s9 + $0x8] sm:$0x77] %v1981_v40 }
 0x5b5   :  { %1990 = vsyncpa [#allocation3], 1 }
 0x5b6   :  { %1991 = vsyncpa [#allocation5], 1 }

</bundles_post_ra>
